<compile_context>
chip_gen: v6e
topology: v6e:2x2x1
jax: 0.10.0
libtpu: 0.0.40
codegen_flags: <defaults>
</compile_context>

<pallas_src>
import jax
import jax.numpy as jnp
from jax.experimental import pallas as pl
from jax.experimental.pallas import tpu as pltpu

EPS = 1e-6  # module spec: LayerNorm32(..., eps=1e-06)


def _round_up(n, m):
    return ((n + m - 1) // m) * m


# ------------------------------ layout glue (plain JAX) ------------------------------
def _to_planes(x5, P):
    """[B, D, H, W, C] -> zero-padded flat z-planes [B, D+2, P, C]."""
    B, D, H, W, C = x5.shape
    xp = jnp.pad(x5, ((0, 0), (1, 1), (1, 1), (1, 1), (0, 0)))
    flat = xp.reshape(B, D + 2, (H + 2) * (W + 2), C)
    return jnp.pad(flat, ((0, 0), (0, 0), (0, P - (H + 2) * (W + 2)), (0, 0)))


def _to_slab(x5):
    """[B, D, H, W, C] -> [B, D, H*(W+2), C] (2 zero columns appended per row)."""
    B, D, H, W, C = x5.shape
    xw = jnp.pad(x5, ((0, 0), (0, 0), (0, 0), (0, 2), (0, 0)))
    return xw.reshape(B, D, H * (W + 2), C)


def _from_slab(slab, H, W):
    """[B, D, H*(W+2), C] -> [B, D, H, W, C] (drop the 2 junk columns)."""
    B, D, L, C = slab.shape
    return slab.reshape(B, D, H, W + 2, C)[:, :, :, :W, :]


# ----------------------------- LayerNorm + SiLU + mask -----------------------------
def _ln_silu_mask_kernel(x_ref, g_ref, b_ref, m_ref, o_ref):
    x = x_ref[...].astype(jnp.float32)                     # LayerNorm32: f32 math
    mu = jnp.mean(x, axis=-1, keepdims=True)
    var = jnp.mean((x - mu) ** 2, axis=-1, keepdims=True)  # biased var (PyTorch LN)
    y = (x - mu) * jax.lax.rsqrt(var + EPS)
    y = y * g_ref[...] + b_ref[...]
    y = y * jax.nn.sigmoid(y)                              # SiLU
    o_ref[...] = (y * m_ref[...]).astype(o_ref.dtype)      # keep inactive voxels at 0


def layernorm_silu_mask(x, gamma, beta, mask, *, tm=512, out_dtype=jnp.bfloat16):
    M, C = x.shape
    Mp = _round_up(M, tm)                                  # no silent tail truncation
    if Mp != M:
        x = jnp.pad(x, ((0, Mp - M), (0, 0)))
        mask = jnp.pad(mask, ((0, Mp - M), (0, 0)))
    gamma = gamma.reshape(1, C).astype(jnp.float32)
    beta = beta.reshape(1, C).astype(jnp.float32)
    out = pl.pallas_call(
        _ln_silu_mask_kernel,
        out_shape=jax.ShapeDtypeStruct((Mp, C), out_dtype),
        grid_spec=pltpu.PrefetchScalarGridSpec(
            num_scalar_prefetch=0,
            grid=(Mp // tm,),
            in_specs=[
                pl.BlockSpec((tm, C), lambda i: (i, 0)),
                pl.BlockSpec((1, C), lambda i: (0, 0)),
                pl.BlockSpec((1, C), lambda i: (0, 0)),
                pl.BlockSpec((tm, 1), lambda i: (i, 0)),
            ],
            out_specs=pl.BlockSpec((tm, C), lambda i: (i, 0)),
        ),
        compiler_params=pltpu.CompilerParams(dimension_semantics=("parallel",)),
    )(x, gamma, beta, mask)
    return out[:M]


# ------------------------- submanifold 3x3x3 sparse conv --------------------------
def _make_conv_kernel(W2, L, fuse_ln_silu, fuse_skip):
    def kernel(*refs):
        if fuse_skip:
            x0, x1, x2, w_ref, b_ref, xs_ref, ws_ref, bs_ref, m_ref, o_ref = refs
        else:
            x0, x1, x2, w_ref, b_ref, m_ref, o_ref = refs
        planes = (x0, x1, x2)                               # padded z-planes [P, Cin]

        # 27 unrolled per-offset MXU dots, f32 accumulation (weights resident in VMEM).
        acc = None
        k = 0
        for dz in range(3):
            for dy in range(3):
                for dx in range(3):
                    off = dy * W2 + dx                      # static flat-slab offset
                    c = jnp.dot(planes[dz][pl.ds(off, L), :], w_ref[k],
                                preferred_element_type=jnp.float32)
                    acc = c if acc is None else acc + c
                    k += 1
        y = acc + b_ref[...]

        if fuse_skip:                                       # skip linear + residual
            y = y + jnp.dot(xs_ref[...], ws_ref[...],
                            preferred_element_type=jnp.float32) + bs_ref[...]
        if fuse_ln_silu:                                    # LN (no affine) + SiLU
            mu = jnp.mean(y, axis=-1, keepdims=True)
            var = jnp.mean((y - mu) ** 2, axis=-1, keepdims=True)
            y = (y - mu) * jax.lax.rsqrt(var + EPS)
            y = y * jax.nn.sigmoid(y)
        # mask keeps inactive voxels (and junk slab columns) at exactly 0 so the
        # submanifold-zero invariant holds for the next conv.
        o_ref[...] = (y * m_ref[...]).astype(o_ref.dtype)
    return kernel


def sparse_subm_conv3d(h5, w27, bias, mask_slab, *, fuse_ln_silu=False, skip=None,
                       out_dtype=jnp.bfloat16):
    """h5: [B,D,H,W,Cin] (zeros at inactive voxels), w27: [27,Cin,Cout], bias: [Cout].
    Returns output in slab layout [B, D, H*(W+2), Cout] (masked)."""
    B, D, H, W, Cin = h5.shape
    Cout = w27.shape[-1]
    W2 = W + 2
    L = H * W2                                   # output rows per z-plane (slab)
    P = _round_up((H + 2) * W2 + 2, 8)           # padded flat plane rows (+2 over-read)

    planes = _to_planes(h5.astype(jnp.bfloat16), P)          # [B, D+2, P, Cin]
    w_bf = w27.astype(jnp.bfloat16)
    b2 = bias.reshape(1, Cout).astype(jnp.float32)

    in_specs = [
        pl.BlockSpec((None, None, P, Cin), lambda b, z: (b, z, 0, 0)),      # plane z
        pl.BlockSpec((None, None, P, Cin), lambda b, z: (b, z + 1, 0, 0)),  # plane z+1
        pl.BlockSpec((None, None, P, Cin), lambda b, z: (b, z + 2, 0, 0)),  # plane z+2
        pl.BlockSpec((27, Cin, Cout), lambda b, z: (0, 0, 0)),              # resident W
        pl.BlockSpec((1, Cout), lambda b, z: (0, 0)),
    ]
    args = [planes, planes, planes, w_bf, b2]

    if skip is not None:
        x_slab, w_skip, b_skip = skip
        Cs = x_slab.shape[-1]
        in_specs += [
            pl.BlockSpec((None, None, L, Cs), lambda b, z: (b, z, 0, 0)),
            pl.BlockSpec((Cs, Cout), lambda b, z: (0, 0)),
            pl.BlockSpec((1, Cout), lambda b, z: (0, 0)),
        ]
        args += [x_slab.astype(jnp.bfloat16), w_skip.astype(jnp.bfloat16),
                 b_skip.reshape(1, Cout).astype(jnp.float32)]

    in_specs.append(pl.BlockSpec((None, None, L, 1), lambda b, z: (b, z, 0, 0)))
    args.append(mask_slab)

    kernel = _make_conv_kernel(W2, L, fuse_ln_silu, skip is not None)
    return pl.pallas_call(
        kernel,
        out_shape=jax.ShapeDtypeStruct((B, D, L, Cout), out_dtype),
        grid_spec=pltpu.PrefetchScalarGridSpec(
            num_scalar_prefetch=0,
            grid=(B, D),
            in_specs=in_specs,
            out_specs=pl.BlockSpec((None, None, L, Cout), lambda b, z: (b, z, 0, 0)),
        ),
        compiler_params=pltpu.CompilerParams(
            dimension_semantics=("parallel", "parallel"),
            vmem_limit_bytes=64 * 1024 * 1024,
        ),
    )(*args)


# --------------------------------- module wrapper ---------------------------------
def init_params(key, channels, out_channels):
    ks = jax.random.split(key, 6)
    p = {}
    # norm1: LayerNorm32(channels, elementwise_affine=True, eps=1e-6)
    p["norm1_gamma"] = 1.0 + 0.1 * jax.random.normal(ks[0], (channels,), jnp.float32)
    p["norm1_beta"] = 0.1 * jax.random.normal(ks[1], (channels,), jnp.float32)
    # conv1: SparseConv3d(channels, out_channels, 3) -> weight [27, Cin, Cout], bias
    p["conv1_w"] = jax.random.normal(ks[2], (27, channels, out_channels), jnp.float32) / jnp.sqrt(27.0 * channels)
    p["conv1_b"] = 0.01 * jax.random.normal(ks[3], (out_channels,), jnp.float32)
    # conv2: zero_module(SparseConv3d(out_channels, out_channels, 3))
    p["conv2_w"] = jnp.zeros((27, out_channels, out_channels), jnp.float32)
    p["conv2_b"] = jnp.zeros((out_channels,), jnp.float32)
    # skip: SparseLinear(channels, out_channels) if channels != out_channels else Identity
    if channels != out_channels:
        p["skip_w"] = jax.random.normal(ks[4], (channels, out_channels), jnp.float32) / jnp.sqrt(float(channels))
        p["skip_b"] = 0.01 * jax.random.normal(ks[5], (out_channels,), jnp.float32)
    else:
        p["skip_w"] = jnp.eye(channels, dtype=jnp.float32)
        p["skip_b"] = jnp.zeros((channels,), jnp.float32)
    return p


def sparse_res_conv3d_forward(x_dense, mask_dense, params):
    # TODO(synk): SparseDownsample/SparseUpsample branch not implemented; module
    # defaults (downsample=False, upsample=False) assumed, so _updown is identity.
    B, D, H, W, Cin = x_dense.shape
    M = B * D * H * W

    mask_flat = mask_dense.reshape(M, 1).astype(jnp.float32)
    mask_slab = _to_slab(mask_dense.reshape(B, D, H, W, 1).astype(jnp.float32))  # [B,D,L,1]
    x_slab = _to_slab(x_dense)                                                    # [B,D,L,Cin]

    # norm1 (affine) + SiLU, masked -> bf16
    h = layernorm_silu_mask(x_dense.reshape(M, Cin), params["norm1_gamma"],
                            params["norm1_beta"], mask_flat)
    h = h.reshape(B, D, H, W, Cin)

    # conv1 (submanifold 3x3x3) with fused norm2 (no affine) + SiLU + mask epilogue
    h = sparse_subm_conv3d(h, params["conv1_w"], params["conv1_b"], mask_slab,
                           fuse_ln_silu=True, out_dtype=jnp.bfloat16)
    h = _from_slab(h, H, W)                                                       # [B,D,H,W,Cout]

    # conv2 (zero-init) with fused skip-linear + residual + mask epilogue
    out = sparse_subm_conv3d(h, params["conv2_w"], params["conv2_b"], mask_slab,
                             fuse_ln_silu=False,
                             skip=(x_slab, params["skip_w"], params["skip_b"]),
                             out_dtype=x_dense.dtype)
    return _from_slab(out, H, W)                                                  # [B,D,H,W,Cout]


if __name__ == "__main__":
    key = jax.random.PRNGKey(0)
    B, R, Cin, Cout = 2, 8, 16, 32          # M = B*R^3 = 1024 grid voxels
    k_feat, k_mask, k_par = jax.random.split(key, 3)

    mask_dense = (jax.random.uniform(k_mask, (B, R, R, R)) < 0.3).astype(jnp.float32)
    feats = jax.random.normal(k_feat, (B, R, R, R, Cin), jnp.float32)
    x_dense = feats * mask_dense[..., None]  # zeros at inactive voxels (sparse feats)

    params = init_params(k_par, Cin, Cout)
    out = sparse_res_conv3d_forward(x_dense, mask_dense, params)
    out = jax.block_until_ready(out)
    assert out.shape == (B, R, R, R, Cout)
    assert bool(jnp.isfinite(out).all())
    print("KERNEL_OK")
</pallas_src>

<mosaic_0001>
module attributes {stable_mosaic.version = 11 : i64} {
  func.func @_ln_silu_mask_kernel(%arg0: i32, %arg1: memref<512x16xf32, #tpu.memory_space<vmem>>, %arg2: memref<1x16xf32, #tpu.memory_space<vmem>>, %arg3: memref<1x16xf32, #tpu.memory_space<vmem>>, %arg4: memref<512x1xf32, #tpu.memory_space<vmem>>, %arg5: memref<512x16xbf16, #tpu.memory_space<vmem>>) attributes {dimension_semantics = [#tpu.dimension_semantics<parallel>], iteration_bounds = array<i64: 2>, scalar_prefetch = 0 : i64, scratch_operands = 0 : i64, tpu.core_type = #tpu.core_type<tc>, window_params = [{transform_indices = @transform_0, window_bounds = array<i64: 512, 16>}, {pipeline_mode = #tpu.pipeline_mode<synchronous>, transform_indices = @transform_1, window_bounds = array<i64: 1, 16>}, {pipeline_mode = #tpu.pipeline_mode<synchronous>, transform_indices = @transform_2, window_bounds = array<i64: 1, 16>}, {transform_indices = @transform_3, window_bounds = array<i64: 512, 1>}, {transform_indices = @transform_4, window_bounds = array<i64: 512, 16>}]} {
    %c0 = arith.constant 0 : index
    %c0_0 = arith.constant 0 : index
    %0 = vector.load %arg1[%c0, %c0_0] : memref<512x16xf32, #tpu.memory_space<vmem>>, vector<512x16xf32>
    %cst = arith.constant dense<0.000000e+00> : vector<512xf32>
    %1 = vector.multi_reduction <add>, %0, %cst [1] : vector<512x16xf32> to vector<512xf32>
    %2 = vector.shape_cast %1 : vector<512xf32> to vector<512x1xf32>
    %cst_1 = arith.constant 1.600000e+01 : f32
    %3 = vector.broadcast %cst_1 : f32 to vector<512x1xf32>
    %4 = arith.divf %2, %3 : vector<512x1xf32>
    %5 = vector.broadcast %4 : vector<512x1xf32> to vector<512x16xf32>
    %6 = arith.subf %0, %5 : vector<512x16xf32>
    %7 = arith.mulf %6, %6 : vector<512x16xf32>
    %cst_2 = arith.constant dense<0.000000e+00> : vector<512xf32>
    %8 = vector.multi_reduction <add>, %7, %cst_2 [1] : vector<512x16xf32> to vector<512xf32>
    %9 = vector.shape_cast %8 : vector<512xf32> to vector<512x1xf32>
    %cst_3 = arith.constant 1.600000e+01 : f32
    %10 = vector.broadcast %cst_3 : f32 to vector<512x1xf32>
    %11 = arith.divf %9, %10 : vector<512x1xf32>
    %12 = vector.broadcast %4 : vector<512x1xf32> to vector<512x16xf32>
    %13 = arith.subf %0, %12 : vector<512x16xf32>
    %cst_4 = arith.constant 9.99999997E-7 : f32
    %14 = vector.broadcast %cst_4 : f32 to vector<512x1xf32>
    %15 = arith.addf %11, %14 : vector<512x1xf32>
    %16 = math.rsqrt %15 : vector<512x1xf32>
    %17 = vector.broadcast %16 : vector<512x1xf32> to vector<512x16xf32>
    %18 = arith.mulf %13, %17 : vector<512x16xf32>
    %c0_5 = arith.constant 0 : index
    %c0_6 = arith.constant 0 : index
    %19 = vector.load %arg2[%c0_5, %c0_6] : memref<1x16xf32, #tpu.memory_space<vmem>>, vector<1x16xf32>
    %20 = vector.broadcast %19 : vector<1x16xf32> to vector<512x16xf32>
    %21 = arith.mulf %18, %20 : vector<512x16xf32>
    %c0_7 = arith.constant 0 : index
    %c0_8 = arith.constant 0 : index
    %22 = vector.load %arg3[%c0_7, %c0_8] : memref<1x16xf32, #tpu.memory_space<vmem>>, vector<1x16xf32>
    %23 = vector.broadcast %22 : vector<1x16xf32> to vector<512x16xf32>
    %24 = arith.addf %21, %23 : vector<512x16xf32>
    %25 = arith.negf %24 : vector<512x16xf32>
    %26 = math.exp %25 : vector<512x16xf32>
    %cst_9 = arith.constant 1.000000e+00 : f32
    %27 = vector.broadcast %cst_9 : f32 to vector<512x16xf32>
    %28 = arith.addf %27, %26 : vector<512x16xf32>
    %29 = arith.divf %27, %28 : vector<512x16xf32>
    %30 = arith.mulf %24, %29 : vector<512x16xf32>
    %c0_10 = arith.constant 0 : index
    %c0_11 = arith.constant 0 : index
    %31 = vector.load %arg4[%c0_10, %c0_11] : memref<512x1xf32, #tpu.memory_space<vmem>>, vector<512x1xf32>
    %32 = vector.broadcast %31 : vector<512x1xf32> to vector<512x16xf32>
    %33 = arith.mulf %30, %32 : vector<512x16xf32>
    %34 = arith.truncf %33 : vector<512x16xf32> to vector<512x16xbf16>
    %c0_12 = arith.constant 0 : index
    %c0_13 = arith.constant 0 : index
    %35 = vector.load %arg5[%c0_12, %c0_13] : memref<512x16xbf16, #tpu.memory_space<vmem>>, vector<512x16xbf16>
    tpu.vector_store %arg5[%c0_12, %c0_13], %34 {strides = array<i32>} : memref<512x16xbf16, #tpu.memory_space<vmem>>, vector<512x16xbf16>,
    return
  }
  func.func @transform_0(%arg0: i32) -> (i32, i32) {
    %c0_i32 = arith.constant 0 : i32
    %c0_i32_0 = arith.constant 0 : i32
    return %arg0, %c0_i32 : i32, i32
  }
  func.func @transform_1(%arg0: i32) -> (i32, i32) {
    %c0_i32 = arith.constant 0 : i32
    %c0_i32_0 = arith.constant 0 : i32
    %c0_i32_1 = arith.constant 0 : i32
    return %c0_i32, %c0_i32_0 : i32, i32
  }
  func.func @transform_2(%arg0: i32) -> (i32, i32) {
    %c0_i32 = arith.constant 0 : i32
    %c0_i32_0 = arith.constant 0 : i32
    %c0_i32_1 = arith.constant 0 : i32
    return %c0_i32, %c0_i32_0 : i32, i32
  }
  func.func @transform_3(%arg0: i32) -> (i32, i32) {
    %c0_i32 = arith.constant 0 : i32
    %c0_i32_0 = arith.constant 0 : i32
    return %arg0, %c0_i32 : i32, i32
  }
  func.func @transform_4(%arg0: i32) -> (i32, i32) {
    %c0_i32 = arith.constant 0 : i32
    %c0_i32_0 = arith.constant 0 : i32
    return %arg0, %c0_i32 : i32, i32
  }
}

</mosaic_0001>

<bundles_post_ra>
// kernel: tpu_custom_call.1
= control target key start
LH: loop header
LB: loop body
LE: loop exit
PB: predicated region body
PF: predicated region fallthrough
CT: control target
= control target key end

     0   :  { %s3188_s15 = smov 0   ;;  %s4989_s0 = inlined_call_operand.vmem [shape: f32[1024,16], index: 0, kind: input, shape index: {}]   ;;  %s4990_s1 = inlined_call_operand.vmem [shape: f32[1,16], index: 1, kind: input, shape index: {}]   ;;  %s4991_s2 = inlined_call_operand.vmem [shape: f32[1,16], index: 2, kind: input, shape index: {}]   ;;  %s4992_s3 = inlined_call_operand.vmem [shape: f32[1024,1], index: 3, kind: input, shape index: {}]   ;;  %s4993_s4 = inlined_call_operand.vmem [shape: bf16[1024,16], index: 4, kind: output, shape index: {}]  }
   0x1 LB: > { %s2548_s16 = sadd.s32 4294967295, %s3160_s15   ;;  %p2552_p0 = scmp.ge.s32.totalorder %s3160_s15, 1  ;;  %s3160_s15 = sphi %s3188_s15, %s14_s15  }
   0x2   : > { %p174_p1 = scmp.lt.s32.totalorder %s3160_s15, 3 }
   0x4   : > { %p175_p2 = pnand %p2552_p0, %p174_p1 }
   0x6   : > { %178 = sbr.rel (%p175_p2) target bundleno = 575 (0x23f), region = 36 }
   0xb   : > { %s2553_s17 = sshll.u32 %s2548_s16, 6  ;;  %vm287_vm0 = vcmask 130048   ;;  %vm2415_vm1 = vcmask 125952  }
   0xc   : > { %p206_p3 = scmp.lt.s32.totalorder %s2553_s17, 127 }
   0xe   : > { %s5220_s17 = smov (!%p206_p3, %s2553_s17), 127 }
   0xf   : > { %s2554_s18 = sshll.u32 %s5220_s17, 3  ;;  %s2558_s7 = sshll.u32 %s5220_s17, 2 }
  0x10   : > { %s3204_s21 = scalar_lea.vmem %s4989_s0, %s2554_s18  ;;  %s3915_s24 = scalar_lea.vmem %s4992_s3, %s2554_s18 }
  0x11   : > { %v3207_v0 = vld [vmem:[%s3204_s21] sm:$0xff]  ;;  %v3210_v1 = vld [vmem:[%s3204_s21 + $0x10] sm:$0xff]  ;;  %v3213_v2 = vld [vmem:[%s3204_s21 + $0x8] sm:$0xff]  ;;  %s4498_s10 = scalar_lea.vmem %s4993_s4, %s2558_s7 }
  0x12   : > { %v288_v3 = vsel %vm287_vm0, %v3207_v0, 0.0  ;;  %v294_v4 = vsel %vm287_vm0, %v3210_v1, 0.0  ;;  %v3220_v5 = vld [vmem:[%s3204_s21 + $0x18] sm:$0xff]  ;;  %v291_v6 = vsel %vm287_vm0, %v3213_v2, 0.0  ;;  %v3227_v8 = vld [vmem:[%s3204_s21 + $0x20] sm:$0xff]  ;;  %v3230_v9 = vld [vmem:[%s3204_s21 + $0x28] sm:$0xff] }
  0x13   : > { %289 = vadd.xlane.f32.xlu0 %v288_v3  ;;  %295 = vadd.xlane.f32.xlu1 %v294_v4  ;;  %v297_v7 = vsel %vm287_vm0, %v3220_v5, 0.0  ;;  %v300_v10 = vsel %vm287_vm0, %v3227_v8, 0.0  ;;  %v303_v11 = vsel %vm287_vm0, %v3230_v9, 0.0  ;;  %v3237_v12 = vld [vmem:[%s3204_s21 + $0x30] sm:$0xff]  ;;  %v3240_v13 = vld [vmem:[%s3204_s21 + $0x38] sm:$0xff]  ;;  %v3247_v16 = vld [vmem:[%s3204_s21 + $0x40] sm:$0xff] }
  0x14   : > { %v306_v14 = vsel %vm287_vm0, %v3237_v12, 0.0  ;;  %v309_v15 = vsel %vm287_vm0, %v3240_v13, 0.0  ;;  %v3250_v17 = vld [vmem:[%s3204_s21 + $0x48] sm:$0xff]  ;;  %v312_v18 = vsel %vm287_vm0, %v3247_v16, 0.0  ;;  %v3257_v20 = vld [vmem:[%s3204_s21 + $0x50] sm:$0xff]  ;;  %v3260_v21 = vld [vmem:[%s3204_s21 + $0x58] sm:$0xff] }
  0x15   : > { %v315_v19 = vsel %vm287_vm0, %v3250_v17, 0.0  ;;  %v318_v22 = vsel %vm287_vm0, %v3257_v20, 0.0  ;;  %v321_v23 = vsel %vm287_vm0, %v3260_v21, 0.0  ;;  %v3267_v24 = vld [vmem:[%s3204_s21 + $0x60] sm:$0xff]  ;;  %v3270_v25 = vld [vmem:[%s3204_s21 + $0x68] sm:$0xff]  ;;  %v3277_v28 = vld [vmem:[%s3204_s21 + $0x70] sm:$0xff] }
  0x16   : > { %v324_v26 = vsel %vm287_vm0, %v3267_v24, 0.0  ;;  %v327_v27 = vsel %vm287_vm0, %v3270_v25, 0.0  ;;  %v3280_v29 = vld [vmem:[%s3204_s21 + $0x78] sm:$0xff]  ;;  %v330_v30 = vsel %vm287_vm0, %v3277_v28, 0.0  ;;  %v3287_v32 = vld [vmem:[%s3204_s21 + $0x80] sm:$0xff]  ;;  %v3290_v33 = vld [vmem:[%s3204_s21 + $0x88] sm:$0xff] }
  0x17   : > { %292 = vadd.xlane.f32.xlu0 %v291_v6  ;;  %298 = vadd.xlane.f32.xlu1 %v297_v7  ;;  %v333_v31 = vsel %vm287_vm0, %v3280_v29, 0.0  ;;  %v336_v34 = vsel %vm287_vm0, %v3287_v32, 0.0  ;;  %v339_v35 = vsel %vm287_vm0, %v3290_v33, 0.0  ;;  %v3297_v36 = vld [vmem:[%s3204_s21 + $0x90] sm:$0xff]  ;;  %v3300_v37 = vld [vmem:[%s3204_s21 + $0x98] sm:$0xff]  ;;  %v3307_v40 = vld [vmem:[%s3204_s21 + $0xa0] sm:$0xff] }
  0x18   : > { %v342_v38 = vsel %vm287_vm0, %v3297_v36, 0.0  ;;  %v345_v39 = vsel %vm287_vm0, %v3300_v37, 0.0  ;;  %v3310_v41 = vld [vmem:[%s3204_s21 + $0xa8] sm:$0xff]  ;;  %v348_v42 = vsel %vm287_vm0, %v3307_v40, 0.0  ;;  %v3317_v44 = vld [vmem:[%s3204_s21 + $0xb0] sm:$0xff]  ;;  %v3320_v45 = vld [vmem:[%s3204_s21 + $0xb8] sm:$0xff] }
  0x19   : > { %v351_v43 = vsel %vm287_vm0, %v3310_v41, 0.0  ;;  %v354_v46 = vsel %vm287_vm0, %v3317_v44, 0.0  ;;  %v357_v47 = vsel %vm287_vm0, %v3320_v45, 0.0  ;;  %v3327_v48 = vld [vmem:[%s3204_s21 + $0xc0] sm:$0xff]  ;;  %v3330_v49 = vld [vmem:[%s3204_s21 + $0xc8] sm:$0xff]  ;;  %v3337_v52 = vld [vmem:[%s3204_s21 + $0xd0] sm:$0xff] }
  0x1a   : > { %v360_v50 = vsel %vm287_vm0, %v3327_v48, 0.0  ;;  %v363_v51 = vsel %vm287_vm0, %v3330_v49, 0.0  ;;  %v3340_v53 = vld [vmem:[%s3204_s21 + $0xd8] sm:$0xff]  ;;  %v366_v54 = vsel %vm287_vm0, %v3337_v52, 0.0  ;;  %v3347_v56 = vld [vmem:[%s3204_s21 + $0xe0] sm:$0xff]  ;;  %v3350_v57 = vld [vmem:[%s3204_s21 + $0xe8] sm:$0xff] }
  0x1b   : > { %301 = vadd.xlane.f32.xlu0 %v300_v10  ;;  %304 = vadd.xlane.f32.xlu1 %v303_v11  ;;  %v369_v55 = vsel %vm287_vm0, %v3340_v53, 0.0  ;;  %v372_v58 = vsel %vm287_vm0, %v3347_v56, 0.0  ;;  %v375_v59 = vsel %vm287_vm0, %v3350_v57, 0.0  ;;  %v3357_v60 = vld [vmem:[%s3204_s21 + $0xf0] sm:$0xff]  ;;  %v3360_v61 = vld [vmem:[%s3204_s21 + $0xf8] sm:$0xff]  ;;  %v3367_v3 = vld [vmem:[%s3204_s21 + $0x100] sm:$0xff] }
  0x1c   : > { %v378_v62 = vsel %vm287_vm0, %v3357_v60, 0.0  ;;  %v381_v63 = vsel %vm287_vm0, %v3360_v61, 0.0  ;;  %v3370_v4 = vld [vmem:[%s3204_s21 + $0x108] sm:$0xff]  ;;  %v384_v6 = vsel %vm287_vm0, %v3367_v3, 0.0  ;;  %v3377_v10 = vld [vmem:[%s3204_s21 + $0x110] sm:$0xff]  ;;  %v3380_v11 = vld [vmem:[%s3204_s21 + $0x118] sm:$0xff] }
  0x1d   : > { %v387_v7 = vsel %vm287_vm0, %v3370_v4, 0.0 }
  0x1f   : > { %307 = vadd.xlane.f32.xlu0 %v306_v14  ;;  %310 = vadd.xlane.f32.xlu1 %v309_v15  ;;  %v390_v14 = vsel %vm287_vm0, %v3377_v10, 0.0  ;;  %v393_v15 = vsel %vm287_vm0, %v3380_v11, 0.0 }
  0x23   : > { %313 = vadd.xlane.f32.xlu0 %v312_v18  ;;  %316 = vadd.xlane.f32.xlu1 %v315_v19  ;;  %v3387_v18 = vld [vmem:[%s3204_s21 + $0x120] sm:$0xff]  ;;  %v3390_v19 = vld [vmem:[%s3204_s21 + $0x128] sm:$0xff] }
  0x27   : > { %319 = vadd.xlane.f32.xlu0 %v318_v22  ;;  %322 = vadd.xlane.f32.xlu1 %v321_v23  ;;  %v396_v22 = vsel %vm287_vm0, %v3387_v18, 0.0  ;;  %v399_v23 = vsel %vm287_vm0, %v3390_v19, 0.0 }
  0x2b   : > { %325 = vadd.xlane.f32.xlu0 %v324_v26  ;;  %328 = vadd.xlane.f32.xlu1 %v327_v27  ;;  %v3397_v26 = vld [vmem:[%s3204_s21 + $0x130] sm:$0xff]  ;;  %v3400_v27 = vld [vmem:[%s3204_s21 + $0x138] sm:$0xff] }
  0x2f   : > { %331 = vadd.xlane.f32.xlu0 %v330_v30  ;;  %334 = vadd.xlane.f32.xlu1 %v333_v31  ;;  %v402_v30 = vsel %vm287_vm0, %v3397_v26, 0.0  ;;  %v405_v31 = vsel %vm287_vm0, %v3400_v27, 0.0 }
  0x33   : > { %337 = vadd.xlane.f32.xlu0 %v336_v34  ;;  %340 = vadd.xlane.f32.xlu1 %v339_v35  ;;  %v3407_v34 = vld [vmem:[%s3204_s21 + $0x140] sm:$0xff]  ;;  %v3410_v35 = vld [vmem:[%s3204_s21 + $0x148] sm:$0xff] }
  0x37   : > { %343 = vadd.xlane.f32.xlu0 %v342_v38  ;;  %346 = vadd.xlane.f32.xlu1 %v345_v39  ;;  %v408_v38 = vsel %vm287_vm0, %v3407_v34, 0.0  ;;  %v411_v39 = vsel %vm287_vm0, %v3410_v35, 0.0 }
  0x3b   : > { %349 = vadd.xlane.f32.xlu0 %v348_v42  ;;  %352 = vadd.xlane.f32.xlu1 %v351_v43  ;;  %v3417_v42 = vld [vmem:[%s3204_s21 + $0x150] sm:$0xff]  ;;  %v3420_v43 = vld [vmem:[%s3204_s21 + $0x158] sm:$0xff] }
  0x3f   : > { %355 = vadd.xlane.f32.xlu0 %v354_v46  ;;  %358 = vadd.xlane.f32.xlu1 %v357_v47  ;;  %v414_v46 = vsel %vm287_vm0, %v3417_v42, 0.0  ;;  %v417_v47 = vsel %vm287_vm0, %v3420_v43, 0.0 }
  0x43   : > { %361 = vadd.xlane.f32.xlu0 %v360_v50  ;;  %364 = vadd.xlane.f32.xlu1 %v363_v51  ;;  %v3427_v50 = vld [vmem:[%s3204_s21 + $0x160] sm:$0xff]  ;;  %v3430_v51 = vld [vmem:[%s3204_s21 + $0x168] sm:$0xff] }
  0x47   : > { %367 = vadd.xlane.f32.xlu0 %v366_v54  ;;  %370 = vadd.xlane.f32.xlu1 %v369_v55  ;;  %v420_v54 = vsel %vm287_vm0, %v3427_v50, 0.0  ;;  %v423_v55 = vsel %vm287_vm0, %v3430_v51, 0.0 }
  0x4b   : > { %373 = vadd.xlane.f32.xlu0 %v372_v58  ;;  %376 = vadd.xlane.f32.xlu1 %v375_v59  ;;  %v3437_v58 = vld [vmem:[%s3204_s21 + $0x170] sm:$0xff]  ;;  %v3440_v59 = vld [vmem:[%s3204_s21 + $0x178] sm:$0xff] }
  0x4f   : > { %379 = vadd.xlane.f32.xlu0 %v378_v62  ;;  %382 = vadd.xlane.f32.xlu1 %v381_v63  ;;  %v426_v62 = vsel %vm287_vm0, %v3437_v58, 0.0  ;;  %v429_v63 = vsel %vm287_vm0, %v3440_v59, 0.0 }
  0x53   : > { %385 = vadd.xlane.f32.xlu0 %v384_v6  ;;  %388 = vadd.xlane.f32.xlu1 %v387_v7  ;;  %v3447_v6 = vld [vmem:[%s3204_s21 + $0x180] sm:$0xff]  ;;  %v3450_v7 = vld [vmem:[%s3204_s21 + $0x188] sm:$0xff] }
  0x57   : > { %391 = vadd.xlane.f32.xlu0 %v390_v14  ;;  %394 = vadd.xlane.f32.xlu1 %v393_v15  ;;  %v432_v14 = vsel %vm287_vm0, %v3447_v6, 0.0  ;;  %v435_v15 = vsel %vm287_vm0, %v3450_v7, 0.0 }
  0x5b   : > { %397 = vadd.xlane.f32.xlu0 %v396_v22  ;;  %400 = vadd.xlane.f32.xlu1 %v399_v23  ;;  %v3457_v22 = vld [vmem:[%s3204_s21 + $0x190] sm:$0xff]  ;;  %v3460_v23 = vld [vmem:[%s3204_s21 + $0x198] sm:$0xff] }
  0x5c   : > { %5065 = vst [vmem:[#allocation2_spill] sm:$0xff] %v3457_v22  ;;  %5066 = vst [vmem:[#allocation3_spill] sm:$0xff] %v3460_v23 }
  0x5f   : > { %403 = vadd.xlane.f32.xlu0 %v402_v30  ;;  %406 = vadd.xlane.f32.xlu1 %v405_v31  ;;  %v438_v30 = vsel %vm287_vm0, %v3457_v22, 0.0  ;;  %v441_v31 = vsel %vm287_vm0, %v3460_v23, 0.0 }
  0x63   : > { %409 = vadd.xlane.f32.xlu0 %v408_v38  ;;  %412 = vadd.xlane.f32.xlu1 %v411_v39  ;;  %v3467_v38 = vld [vmem:[%s3204_s21 + $0x1a0] sm:$0xff]  ;;  %v3470_v39 = vld [vmem:[%s3204_s21 + $0x1a8] sm:$0xff] }
  0x64   : > { %5067 = vst [vmem:[#allocation4_spill] sm:$0xff] %v3467_v38  ;;  %5068 = vst [vmem:[#allocation5_spill] sm:$0xff] %v3470_v39 }
  0x67   : > { %415 = vadd.xlane.f32.xlu0 %v414_v46  ;;  %418 = vadd.xlane.f32.xlu1 %v417_v47  ;;  %v444_v46 = vsel %vm287_vm0, %v3467_v38, 0.0  ;;  %v447_v47 = vsel %vm287_vm0, %v3470_v39, 0.0 }
  0x6b   : > { %421 = vadd.xlane.f32.xlu0 %v420_v54  ;;  %424 = vadd.xlane.f32.xlu1 %v423_v55  ;;  %v3477_v54 = vld [vmem:[%s3204_s21 + $0x1b0] sm:$0xff]  ;;  %v3480_v55 = vld [vmem:[%s3204_s21 + $0x1b8] sm:$0xff] }
  0x6c   : > { %5069 = vst [vmem:[#allocation6_spill] sm:$0xff] %v3477_v54  ;;  %5070 = vst [vmem:[#allocation7_spill] sm:$0xff] %v3480_v55 }
  0x6f   : > { %427 = vadd.xlane.f32.xlu0 %v426_v62  ;;  %430 = vadd.xlane.f32.xlu1 %v429_v63  ;;  %v450_v62 = vsel %vm287_vm0, %v3477_v54, 0.0  ;;  %v453_v63 = vsel %vm287_vm0, %v3480_v55, 0.0  ;;  %v3510_v54 = vld [vmem:[%s3204_s21 + $0x1e8] sm:$0xff] }
  0x70   : > { %5076 = vst [vmem:[#allocation13_spill] sm:$0xff] %v3510_v54 }
  0x73   : > { %433 = vadd.xlane.f32.xlu0 %v432_v14  ;;  %436 = vadd.xlane.f32.xlu1 %v435_v15  ;;  %v3487_v14 = vld [vmem:[%s3204_s21 + $0x1c0] sm:$0xff]  ;;  %v3490_v15 = vld [vmem:[%s3204_s21 + $0x1c8] sm:$0xff] }
  0x74   : > { %5071 = vst [vmem:[#allocation8_spill] sm:$0xff] %v3487_v14  ;;  %5072 = vst [vmem:[#allocation9_spill] sm:$0xff] %v3490_v15 }
  0x77   : > { %439 = vadd.xlane.f32.xlu0 %v438_v30  ;;  %442 = vadd.xlane.f32.xlu1 %v441_v31  ;;  %v456_v30 = vsel %vm287_vm0, %v3487_v14, 0.0  ;;  %v459_v31 = vsel %vm287_vm0, %v3490_v15, 0.0  ;;  %v471_v14 = vsel %vm287_vm0, %v3510_v54, 0.0 }
  0x7b   : > { %445 = vadd.xlane.f32.xlu0 %v444_v46  ;;  %448 = vadd.xlane.f32.xlu1 %v447_v47  ;;  %v3497_v46 = vld [vmem:[%s3204_s21 + $0x1d0] sm:$0xff]  ;;  %v3500_v47 = vld [vmem:[%s3204_s21 + $0x1d8] sm:$0xff] }
  0x7c   : > { %5073 = vst [vmem:[#allocation10_spill] sm:$0xff] %v3497_v46  ;;  %5074 = vst [vmem:[#allocation11_spill] sm:$0xff] %v3500_v47  ;;  %v462_v55 = vsel %vm287_vm0, %v3497_v46, 0.0 }
  0x7f   : > { %451 = vadd.xlane.f32.xlu0 %v450_v62  ;;  %454 = vadd.xlane.f32.xlu1 %v453_v63  ;;  %v465_v62 = vsel %vm287_vm0, %v3500_v47, 0.0  ;;  %v3507_v63 = vld [vmem:[%s3204_s21 + $0x1e0] sm:$0xff] }
  0x80   : > { %5075 = vst [vmem:[#allocation12_spill] sm:$0xff] %v3507_v63  ;;  %v468_v15 = vsel %vm287_vm0, %v3507_v63, 0.0 }
  0x83   : > { %457 = vadd.xlane.f32.xlu0 %v456_v30  ;;  %460 = vadd.xlane.f32.xlu1 %v459_v31  ;;  %v3517_v30 = vld [vmem:[%s3204_s21 + $0x1f0] sm:$0xff]  ;;  %v3520_v31 = vld [vmem:[%s3204_s21 + $0x1f8] sm:$0xff] }
  0x84   : > { %5077 = vst [vmem:[#allocation14_spill] sm:$0xff] %v3517_v30  ;;  %v474_v47 = vsel %vm287_vm0, %v3517_v30, 0.0  ;;  %v477_v46 = vsel %vm287_vm0, %v3520_v31, 0.0 }
  0x87   : > { %463 = vadd.xlane.f32.xlu0 %v462_v55  ;;  %466 = vadd.xlane.f32.xlu1 %v465_v62 }
  0x8b   : > { %469 = vadd.xlane.f32.xlu0 %v468_v15  ;;  %472 = vadd.xlane.f32.xlu1 %v471_v14 }
  0x8f   : > { %475 = vadd.xlane.f32.xlu0 %v474_v47  ;;  %478 = vadd.xlane.f32.xlu1 %v477_v46 }
  0x9c   : > { %v290_v55 = vpop.xlane.xlu0 %289  ;;  %v296_v62 = vpop.xlane.xlu1 %295 }
  0x9d   : > { %v481_v63 = vmul.f32 0.0625, %v290_v55  ;;  %v483_v39 = vmul.f32 0.0625, %v296_v62 }
  0x9f   : > { %v3527_v54 = vsub.f32 %v3207_v0, %v481_v63  ;;  %v3530_v38 = vsub.f32 %v3210_v1, %v483_v39 }
  0xa0   : > { %v293_v15 = vpop.xlane.xlu0 %292  ;;  %v299_v14 = vpop.xlane.xlu1 %298 }
  0xa1   : > { %5078 = vst [vmem:[#allocation15_spill] sm:$0xff] %v3530_v38  ;;  %v482_v23 = vmul.f32 0.0625, %v293_v15  ;;  %v484_v22 = vmul.f32 0.0625, %v299_v14  ;;  %v609_v30 = vmul.f32 %v3527_v54, %v3527_v54  ;;  %v611_v46 = vmul.f32 %v3530_v38, %v3530_v38 }
  0xa3   : > { %v3537_v47 = vsub.f32 %v3213_v2, %v482_v23  ;;  %v3540_v55 = vsub.f32 %v3220_v5, %v484_v22  ;;  %v673_v0 = vsel %vm287_vm0, %v609_v30, 0.0  ;;  %v679_v63 = vsel %vm287_vm0, %v611_v46, 0.0 }
  0xa4   : > { %674 = vadd.xlane.f32.xlu0 %v673_v0  ;;  %v302_v1 = vpop.xlane.xlu0 %301  ;;  %v305_v39 = vpop.xlane.xlu1 %304 }
  0xa5   : > { %v485_v62 = vmul.f32 0.0625, %v302_v1  ;;  %v486_v15 = vmul.f32 0.0625, %v305_v39  ;;  %v610_v14 = vmul.f32 %v3537_v47, %v3537_v47  ;;  %v612_v38 = vmul.f32 %v3540_v55, %v3540_v55 }
  0xa7   : > { %v3549_v2 = vsub.f32 %v3227_v8, %v485_v62  ;;  %v3552_v5 = vsub.f32 %v3230_v9, %v486_v15  ;;  %v676_v22 = vsel %vm287_vm0, %v610_v14, 0.0  ;;  %v682_v46 = vsel %vm287_vm0, %v612_v38, 0.0 }
  0xa8   : > { %680 = vadd.xlane.f32.xlu0 %v679_v63  ;;  %677 = vadd.xlane.f32.xlu1 %v676_v22  ;;  %v308_v23 = vpop.xlane.xlu0 %307  ;;  %v311_v30 = vpop.xlane.xlu1 %310 }
  0xa9   : > { %v487_v0 = vmul.f32 0.0625, %v308_v23  ;;  %v488_v1 = vmul.f32 0.0625, %v311_v30  ;;  %v613_v39 = vmul.f32 %v3549_v2, %v3549_v2  ;;  %v614_v8 = vmul.f32 %v3552_v5, %v3552_v5 }
  0xab   : > { %v3561_v62 = vsub.f32 %v3237_v12, %v487_v0  ;;  %v3564_v9 = vsub.f32 %v3240_v13, %v488_v1  ;;  %v685_v63 = vsel %vm287_vm0, %v613_v39, 0.0  ;;  %v688_v14 = vsel %vm287_vm0, %v614_v8, 0.0 }
  0xac   : > { %683 = vadd.xlane.f32.xlu1 %v682_v46  ;;  %686 = vadd.xlane.f32.xlu0 %v685_v63  ;;  %v314_v15 = vpop.xlane.xlu0 %313  ;;  %v317_v38 = vpop.xlane.xlu1 %316 }
  0xad   : > { %v489_v22 = vmul.f32 0.0625, %v314_v15  ;;  %v490_v23 = vmul.f32 0.0625, %v317_v38  ;;  %v615_v30 = vmul.f32 %v3561_v62, %v3561_v62  ;;  %v616_v12 = vmul.f32 %v3564_v9, %v3564_v9 }
  0xaf   : > { %v3573_v0 = vsub.f32 %v3247_v16, %v489_v22  ;;  %v3576_v13 = vsub.f32 %v3250_v17, %v490_v23  ;;  %v691_v46 = vsel %vm287_vm0, %v615_v30, 0.0  ;;  %v694_v8 = vsel %vm287_vm0, %v616_v12, 0.0 }
  0xb0   : > { %689 = vadd.xlane.f32.xlu1 %v688_v14  ;;  %692 = vadd.xlane.f32.xlu0 %v691_v46  ;;  %v320_v1 = vpop.xlane.xlu0 %319  ;;  %v323_v39 = vpop.xlane.xlu1 %322 }
  0xb1   : > { %v491_v63 = vmul.f32 0.0625, %v320_v1  ;;  %v492_v15 = vmul.f32 0.0625, %v323_v39  ;;  %v617_v38 = vmul.f32 %v3573_v0, %v3573_v0  ;;  %v618_v16 = vmul.f32 %v3576_v13, %v3576_v13 }
  0xb3   : > { %v3585_v22 = vsub.f32 %v3257_v20, %v491_v63  ;;  %v3588_v17 = vsub.f32 %v3260_v21, %v492_v15  ;;  %v697_v14 = vsel %vm287_vm0, %v617_v38, 0.0  ;;  %v700_v12 = vsel %vm287_vm0, %v618_v16, 0.0 }
  0xb4   : > { %695 = vadd.xlane.f32.xlu1 %v694_v8  ;;  %698 = vadd.xlane.f32.xlu0 %v697_v14  ;;  %v326_v23 = vpop.xlane.xlu0 %325  ;;  %v329_v30 = vpop.xlane.xlu1 %328  ;;  %v3162_v63 = vmov 0  }
  0xb5   : > { %5079 = vst [vmem:[#allocation16_spill] sm:$0xff] %v3585_v22  ;;  %v493_v46 = vmul.f32 0.0625, %v326_v23  ;;  %v494_v1 = vmul.f32 0.0625, %v329_v30  ;;  %v619_v39 = vmul.f32 %v3585_v22, %v3585_v22  ;;  %v620_v20 = vmul.f32 %v3588_v17, %v3588_v17  ;;  %2765 = vset.pattern.permute.xlu1 %v3162_v63  ;;  %2764 = vset.pattern.permute.xlu0 %v3162_v63 }
  0xb7   : > { %v3597_v21 = vsub.f32 %v3267_v24, %v493_v46  ;;  %v3600_v8 = vsub.f32 %v3270_v25, %v494_v1  ;;  %v703_v15 = vsel %vm287_vm0, %v619_v39, 0.0  ;;  %v706_v14 = vsel %vm287_vm0, %v620_v20, 0.0 }
  0xb8   : > { %701 = vadd.xlane.f32.xlu1 %v700_v12  ;;  %704 = vadd.xlane.f32.xlu0 %v703_v15  ;;  %v332_v38 = vpop.xlane.xlu0 %331  ;;  %v335_v16 = vpop.xlane.xlu1 %334 }
  0xb9   : > { %v495_v23 = vmul.f32 0.0625, %v332_v38  ;;  %v496_v30 = vmul.f32 0.0625, %v335_v16  ;;  %v621_v22 = vmul.f32 %v3597_v21, %v3597_v21  ;;  %v622_v24 = vmul.f32 %v3600_v8, %v3600_v8 }
  0xbb   : > { %v3609_v46 = vsub.f32 %v3277_v28, %v495_v23  ;;  %v3612_v25 = vsub.f32 %v3280_v29, %v496_v30  ;;  %v709_v12 = vsel %vm287_vm0, %v621_v22, 0.0  ;;  %v712_v20 = vsel %vm287_vm0, %v622_v24, 0.0 }
  0xbc   : > { %707 = vadd.xlane.f32.xlu1 %v706_v14  ;;  %710 = vadd.xlane.f32.xlu0 %v709_v12  ;;  %v338_v1 = vpop.xlane.xlu0 %337  ;;  %v341_v39 = vpop.xlane.xlu1 %340 }
  0xbd   : > { %v497_v63 = vmul.f32 0.0625, %v338_v1  ;;  %v498_v15 = vmul.f32 0.0625, %v341_v39  ;;  %v623_v38 = vmul.f32 %v3609_v46, %v3609_v46  ;;  %v624_v28 = vmul.f32 %v3612_v25, %v3612_v25 }
  0xbf   : > { %v3621_v16 = vsub.f32 %v3287_v32, %v497_v63  ;;  %v3624_v29 = vsub.f32 %v3290_v33, %v498_v15  ;;  %v715_v22 = vsel %vm287_vm0, %v623_v38, 0.0  ;;  %v718_v30 = vsel %vm287_vm0, %v624_v28, 0.0 }
  0xc0   : > { %713 = vadd.xlane.f32.xlu1 %v712_v20  ;;  %716 = vadd.xlane.f32.xlu0 %v715_v22  ;;  %v344_v14 = vpop.xlane.xlu0 %343  ;;  %v347_v23 = vpop.xlane.xlu1 %346 }
  0xc1   : > { %v499_v24 = vmul.f32 0.0625, %v344_v14  ;;  %v500_v12 = vmul.f32 0.0625, %v347_v23  ;;  %v625_v1 = vmul.f32 %v3621_v16, %v3621_v16  ;;  %v626_v32 = vmul.f32 %v3624_v29, %v3624_v29 }
  0xc3   : > { %v3633_v39 = vsub.f32 %v3297_v36, %v499_v24  ;;  %v3636_v33 = vsub.f32 %v3300_v37, %v500_v12  ;;  %v721_v20 = vsel %vm287_vm0, %v625_v1, 0.0  ;;  %v724_v38 = vsel %vm287_vm0, %v626_v32, 0.0 }
  0xc4   : > { %719 = vadd.xlane.f32.xlu1 %v718_v30  ;;  %722 = vadd.xlane.f32.xlu0 %v721_v20  ;;  %v350_v63 = vpop.xlane.xlu0 %349  ;;  %v353_v15 = vpop.xlane.xlu1 %352 }
  0xc5   : > { %v501_v28 = vmul.f32 0.0625, %v350_v63  ;;  %v502_v22 = vmul.f32 0.0625, %v353_v15  ;;  %v627_v14 = vmul.f32 %v3633_v39, %v3633_v39  ;;  %v628_v36 = vmul.f32 %v3636_v33, %v3636_v33 }
  0xc7   : > { %v3645_v23 = vsub.f32 %v3307_v40, %v501_v28  ;;  %v3648_v37 = vsub.f32 %v3310_v41, %v502_v22  ;;  %v727_v30 = vsel %vm287_vm0, %v627_v14, 0.0  ;;  %v730_v1 = vsel %vm287_vm0, %v628_v36, 0.0 }
  0xc8   : > { %725 = vadd.xlane.f32.xlu1 %v724_v38  ;;  %728 = vadd.xlane.f32.xlu0 %v727_v30  ;;  %v356_v24 = vpop.xlane.xlu0 %355  ;;  %v359_v12 = vpop.xlane.xlu1 %358 }
  0xc9   : > { %v503_v32 = vmul.f32 0.0625, %v356_v24  ;;  %v504_v20 = vmul.f32 0.0625, %v359_v12  ;;  %v629_v63 = vmul.f32 %v3645_v23, %v3645_v23  ;;  %v630_v40 = vmul.f32 %v3648_v37, %v3648_v37 }
  0xcb   : > { %v3657_v15 = vsub.f32 %v3317_v44, %v503_v32  ;;  %v3660_v41 = vsub.f32 %v3320_v45, %v504_v20  ;;  %v733_v38 = vsel %vm287_vm0, %v629_v63, 0.0  ;;  %v736_v14 = vsel %vm287_vm0, %v630_v40, 0.0 }
  0xcc   : > { %731 = vadd.xlane.f32.xlu1 %v730_v1  ;;  %734 = vadd.xlane.f32.xlu0 %v733_v38  ;;  %v362_v28 = vpop.xlane.xlu0 %361  ;;  %v365_v22 = vpop.xlane.xlu1 %364 }
  0xcd   : > { %v505_v36 = vmul.f32 0.0625, %v362_v28  ;;  %v506_v30 = vmul.f32 0.0625, %v365_v22  ;;  %v631_v24 = vmul.f32 %v3657_v15, %v3657_v15  ;;  %v632_v44 = vmul.f32 %v3660_v41, %v3660_v41 }
  0xcf   : > { %v3669_v12 = vsub.f32 %v3327_v48, %v505_v36  ;;  %v3672_v45 = vsub.f32 %v3330_v49, %v506_v30  ;;  %v739_v1 = vsel %vm287_vm0, %v631_v24, 0.0  ;;  %v742_v63 = vsel %vm287_vm0, %v632_v44, 0.0 }
  0xd0   : > { %737 = vadd.xlane.f32.xlu1 %v736_v14  ;;  %740 = vadd.xlane.f32.xlu0 %v739_v1  ;;  %v368_v32 = vpop.xlane.xlu0 %367  ;;  %v371_v20 = vpop.xlane.xlu1 %370 }
  0xd1   : > { %v507_v40 = vmul.f32 0.0625, %v368_v32  ;;  %v508_v38 = vmul.f32 0.0625, %v371_v20  ;;  %v633_v28 = vmul.f32 %v3669_v12, %v3669_v12  ;;  %v634_v48 = vmul.f32 %v3672_v45, %v3672_v45 }
  0xd3   : > { %v3681_v22 = vsub.f32 %v3337_v52, %v507_v40  ;;  %v3684_v49 = vsub.f32 %v3340_v53, %v508_v38  ;;  %v745_v14 = vsel %vm287_vm0, %v633_v28, 0.0  ;;  %v748_v24 = vsel %vm287_vm0, %v634_v48, 0.0 }
  0xd4   : > { %743 = vadd.xlane.f32.xlu1 %v742_v63  ;;  %746 = vadd.xlane.f32.xlu0 %v745_v14  ;;  %v374_v36 = vpop.xlane.xlu0 %373  ;;  %v377_v30 = vpop.xlane.xlu1 %376 }
  0xd5   : > { %5080 = vst [vmem:[#allocation17_spill] sm:$0xff] %v3681_v22  ;;  %v509_v44 = vmul.f32 0.0625, %v374_v36  ;;  %v510_v1 = vmul.f32 0.0625, %v377_v30  ;;  %v635_v32 = vmul.f32 %v3681_v22, %v3681_v22  ;;  %v636_v52 = vmul.f32 %v3684_v49, %v3684_v49 }
  0xd7   : > { %v3693_v20 = vsub.f32 %v3347_v56, %v509_v44  ;;  %v3696_v53 = vsub.f32 %v3350_v57, %v510_v1  ;;  %v751_v63 = vsel %vm287_vm0, %v635_v32, 0.0  ;;  %v754_v28 = vsel %vm287_vm0, %v636_v52, 0.0 }
  0xd8   : > { %749 = vadd.xlane.f32.xlu1 %v748_v24  ;;  %752 = vadd.xlane.f32.xlu0 %v751_v63  ;;  %v380_v40 = vpop.xlane.xlu0 %379  ;;  %v383_v38 = vpop.xlane.xlu1 %382 }
  0xd9   : > { %5081 = vst [vmem:[#allocation18_spill] sm:$0xff] %v3693_v20  ;;  %v511_v48 = vmul.f32 0.0625, %v380_v40  ;;  %v512_v14 = vmul.f32 0.0625, %v383_v38  ;;  %v637_v36 = vmul.f32 %v3693_v20, %v3693_v20  ;;  %v638_v56 = vmul.f32 %v3696_v53, %v3696_v53 }
  0xdb   : > { %v3705_v30 = vsub.f32 %v3357_v60, %v511_v48  ;;  %v3708_v57 = vsub.f32 %v3360_v61, %v512_v14  ;;  %v757_v24 = vsel %vm287_vm0, %v637_v36, 0.0  ;;  %v760_v32 = vsel %vm287_vm0, %v638_v56, 0.0 }
  0xdc   : > { %755 = vadd.xlane.f32.xlu1 %v754_v28  ;;  %758 = vadd.xlane.f32.xlu0 %v757_v24  ;;  %v386_v44 = vpop.xlane.xlu0 %385  ;;  %v389_v1 = vpop.xlane.xlu1 %388 }
  0xdd   : > { %5082 = vst [vmem:[#allocation19_spill] sm:$0xff] %v3705_v30  ;;  %v513_v52 = vmul.f32 0.0625, %v386_v44  ;;  %v514_v63 = vmul.f32 0.0625, %v389_v1  ;;  %v639_v40 = vmul.f32 %v3705_v30, %v3705_v30  ;;  %v640_v60 = vmul.f32 %v3708_v57, %v3708_v57 }
  0xdf   : > { %v3717_v38 = vsub.f32 %v3367_v3, %v513_v52  ;;  %v3720_v61 = vsub.f32 %v3370_v4, %v514_v63  ;;  %v763_v28 = vsel %vm287_vm0, %v639_v40, 0.0  ;;  %v766_v36 = vsel %vm287_vm0, %v640_v60, 0.0 }
  0xe0   : > { %761 = vadd.xlane.f32.xlu1 %v760_v32  ;;  %764 = vadd.xlane.f32.xlu0 %v763_v28  ;;  %v392_v48 = vpop.xlane.xlu0 %391  ;;  %v395_v14 = vpop.xlane.xlu1 %394 }
  0xe1   : > { %5083 = vst [vmem:[#allocation20_spill] sm:$0xff] %v3717_v38  ;;  %v515_v56 = vmul.f32 0.0625, %v392_v48  ;;  %v516_v24 = vmul.f32 0.0625, %v395_v14  ;;  %v641_v44 = vmul.f32 %v3717_v38, %v3717_v38  ;;  %v642_v3 = vmul.f32 %v3720_v61, %v3720_v61 }
  0xe3   : > { %v3729_v1 = vsub.f32 %v3377_v10, %v515_v56  ;;  %v3732_v4 = vsub.f32 %v3380_v11, %v516_v24  ;;  %v769_v32 = vsel %vm287_vm0, %v641_v44, 0.0  ;;  %v772_v40 = vsel %vm287_vm0, %v642_v3, 0.0 }
  0xe4   : > { %767 = vadd.xlane.f32.xlu1 %v766_v36  ;;  %770 = vadd.xlane.f32.xlu0 %v769_v32  ;;  %v398_v52 = vpop.xlane.xlu0 %397  ;;  %v401_v63 = vpop.xlane.xlu1 %400 }
  0xe5   : > { %5084 = vst [vmem:[#allocation21_spill] sm:$0xff] %v3729_v1  ;;  %v517_v60 = vmul.f32 0.0625, %v398_v52  ;;  %v518_v28 = vmul.f32 0.0625, %v401_v63  ;;  %v643_v48 = vmul.f32 %v3729_v1, %v3729_v1  ;;  %v644_v10 = vmul.f32 %v3732_v4, %v3732_v4 }
  0xe7   : > { %v3741_v14 = vsub.f32 %v3387_v18, %v517_v60  ;;  %v3744_v11 = vsub.f32 %v3390_v19, %v518_v28  ;;  %v775_v36 = vsel %vm287_vm0, %v643_v48, 0.0  ;;  %v778_v44 = vsel %vm287_vm0, %v644_v10, 0.0 }
  0xe8   : > { %773 = vadd.xlane.f32.xlu1 %v772_v40  ;;  %776 = vadd.xlane.f32.xlu0 %v775_v36  ;;  %v404_v56 = vpop.xlane.xlu0 %403  ;;  %v407_v24 = vpop.xlane.xlu1 %406 }
  0xe9   : > { %5085 = vst [vmem:[#allocation22_spill] sm:$0xff] %v3741_v14  ;;  %5086 = vst [vmem:[#allocation23_spill] sm:$0xff] %v3744_v11  ;;  %v519_v3 = vmul.f32 0.0625, %v404_v56  ;;  %v520_v32 = vmul.f32 0.0625, %v407_v24  ;;  %v645_v52 = vmul.f32 %v3741_v14, %v3741_v14  ;;  %v646_v18 = vmul.f32 %v3744_v11, %v3744_v11 }
  0xeb   : > { %v3753_v63 = vsub.f32 %v3397_v26, %v519_v3  ;;  %v3756_v19 = vsub.f32 %v3400_v27, %v520_v32  ;;  %v781_v40 = vsel %vm287_vm0, %v645_v52, 0.0  ;;  %v784_v48 = vsel %vm287_vm0, %v646_v18, 0.0 }
  0xec   : > { %779 = vadd.xlane.f32.xlu1 %v778_v44  ;;  %782 = vadd.xlane.f32.xlu0 %v781_v40  ;;  %v410_v60 = vpop.xlane.xlu0 %409  ;;  %v413_v28 = vpop.xlane.xlu1 %412 }
  0xed   : > { %5087 = vst [vmem:[#allocation24_spill] sm:$0xff] %v3753_v63  ;;  %5088 = vst [vmem:[#allocation25_spill] sm:$0xff] %v3756_v19  ;;  %v521_v10 = vmul.f32 0.0625, %v410_v60  ;;  %v522_v36 = vmul.f32 0.0625, %v413_v28  ;;  %v647_v56 = vmul.f32 %v3753_v63, %v3753_v63  ;;  %v648_v26 = vmul.f32 %v3756_v19, %v3756_v19  ;;  %v1748_v19 = vld [vmem:[%s3915_s24 + $0x128] sm:$0xff] }
  0xef   : > { %v3765_v24 = vsub.f32 %v3407_v34, %v521_v10  ;;  %v3768_v27 = vsub.f32 %v3410_v35, %v522_v36  ;;  %v787_v44 = vsel %vm287_vm0, %v647_v56, 0.0  ;;  %v790_v52 = vsel %vm287_vm0, %v648_v26, 0.0 }
  0xf0   : > { %785 = vadd.xlane.f32.xlu1 %v784_v48  ;;  %788 = vadd.xlane.f32.xlu0 %v787_v44  ;;  %v416_v3 = vpop.xlane.xlu0 %415  ;;  %v419_v32 = vpop.xlane.xlu1 %418 }
  0xf1   : > { %5089 = vst [vmem:[#allocation26_spill] sm:$0xff] %v3765_v24  ;;  %5090 = vst [vmem:[#allocation27_spill] sm:$0xff] %v3768_v27  ;;  %v523_v18 = vmul.f32 0.0625, %v416_v3  ;;  %v524_v40 = vmul.f32 0.0625, %v419_v32  ;;  %v649_v60 = vmul.f32 %v3765_v24, %v3765_v24  ;;  %v650_v34 = vmul.f32 %v3768_v27, %v3768_v27  ;;  %v1746_v27 = vld [vmem:[%s3915_s24 + $0x118] sm:$0xff] }
  0xf3   : > { %v3777_v28 = vsub.f32 %v3417_v42, %v523_v18  ;;  %v3780_v35 = vsub.f32 %v3420_v43, %v524_v40  ;;  %v793_v48 = vsel %vm287_vm0, %v649_v60, 0.0  ;;  %v796_v56 = vsel %vm287_vm0, %v650_v34, 0.0 }
  0xf4   : > { %791 = vadd.xlane.f32.xlu1 %v790_v52  ;;  %794 = vadd.xlane.f32.xlu0 %v793_v48  ;;  %v422_v10 = vpop.xlane.xlu0 %421  ;;  %v425_v36 = vpop.xlane.xlu1 %424 }
  0xf5   : > { %5091 = vst [vmem:[#allocation28_spill] sm:$0xff] %v3777_v28  ;;  %5092 = vst [vmem:[#allocation29_spill] sm:$0xff] %v3780_v35  ;;  %v525_v26 = vmul.f32 0.0625, %v422_v10  ;;  %v526_v44 = vmul.f32 0.0625, %v425_v36  ;;  %v651_v3 = vmul.f32 %v3777_v28, %v3777_v28  ;;  %v652_v42 = vmul.f32 %v3780_v35, %v3780_v35 }
  0xf7   : > { %v3789_v32 = vsub.f32 %v3427_v50, %v525_v26  ;;  %v3792_v43 = vsub.f32 %v3430_v51, %v526_v44  ;;  %v799_v52 = vsel %vm287_vm0, %v651_v3, 0.0  ;;  %v802_v60 = vsel %vm287_vm0, %v652_v42, 0.0 }
  0xf8   : > { %797 = vadd.xlane.f32.xlu1 %v796_v56  ;;  %800 = vadd.xlane.f32.xlu0 %v799_v52  ;;  %v428_v18 = vpop.xlane.xlu0 %427  ;;  %v431_v40 = vpop.xlane.xlu1 %430 }
  0xf9   : > { %5093 = vst [vmem:[#allocation30_spill] sm:$0xff] %v3789_v32  ;;  %5094 = vst [vmem:[#allocation31_spill] sm:$0xff] %v3792_v43  ;;  %v527_v34 = vmul.f32 0.0625, %v428_v18  ;;  %v528_v48 = vmul.f32 0.0625, %v431_v40  ;;  %v653_v10 = vmul.f32 %v3789_v32, %v3789_v32  ;;  %v654_v50 = vmul.f32 %v3792_v43, %v3792_v43 }
  0xfb   : > { %v3801_v36 = vsub.f32 %v3437_v58, %v527_v34  ;;  %v3804_v51 = vsub.f32 %v3440_v59, %v528_v48  ;;  %v805_v56 = vsel %vm287_vm0, %v653_v10, 0.0  ;;  %v808_v3 = vsel %vm287_vm0, %v654_v50, 0.0 }
  0xfc   : > { %803 = vadd.xlane.f32.xlu1 %v802_v60  ;;  %806 = vadd.xlane.f32.xlu0 %v805_v56  ;;  %v434_v26 = vpop.xlane.xlu0 %433  ;;  %v437_v44 = vpop.xlane.xlu1 %436 }
  0xfd   : > { %5095 = vst [vmem:[#allocation32_spill] sm:$0xff] %v3801_v36  ;;  %5096 = vst [vmem:[#allocation33_spill] sm:$0xff] %v3804_v51  ;;  %v529_v42 = vmul.f32 0.0625, %v434_v26  ;;  %v530_v52 = vmul.f32 0.0625, %v437_v44  ;;  %v655_v18 = vmul.f32 %v3801_v36, %v3801_v36  ;;  %v656_v58 = vmul.f32 %v3804_v51, %v3804_v51  ;;  %v5099_v44 = vld [vmem:[#allocation2_spill] sm:$0xff] }
  0xff   : > { %v3813_v40 = vsub.f32 %v3447_v6, %v529_v42  ;;  %v3816_v59 = vsub.f32 %v3450_v7, %v530_v52  ;;  %v811_v60 = vsel %vm287_vm0, %v655_v18, 0.0  ;;  %v814_v10 = vsel %vm287_vm0, %v656_v58, 0.0  ;;  %v5101_v7 = vld [vmem:[#allocation3_spill] sm:$0xff] }
 0x100   : > { %809 = vadd.xlane.f32.xlu1 %v808_v3  ;;  %812 = vadd.xlane.f32.xlu0 %v811_v60  ;;  %v440_v34 = vpop.xlane.xlu0 %439  ;;  %v443_v48 = vpop.xlane.xlu1 %442 }
 0x101   : > { %5097 = vst [vmem:[#allocation34_spill] sm:$0xff] %v3813_v40  ;;  %5098 = vst [vmem:[#allocation35_spill] sm:$0xff] %v3816_v59  ;;  %v531_v50 = vmul.f32 0.0625, %v440_v34  ;;  %v532_v56 = vmul.f32 0.0625, %v443_v48  ;;  %v657_v26 = vmul.f32 %v3813_v40, %v3813_v40  ;;  %v658_v6 = vmul.f32 %v3816_v59, %v3816_v59 }
 0x103   : > { %v3825_v42 = vsub.f32 %v5099_v44, %v531_v50  ;;  %v3828_v52 = vsub.f32 %v5101_v7, %v532_v56  ;;  %v817_v3 = vsel %vm287_vm0, %v657_v26, 0.0  ;;  %v820_v60 = vsel %vm287_vm0, %v658_v6, 0.0  ;;  %v5103_v44 = vld [vmem:[#allocation4_spill] sm:$0xff]  ;;  %v5105_v56 = vld [vmem:[#allocation5_spill] sm:$0xff] }
 0x104   : > { %815 = vadd.xlane.f32.xlu1 %v814_v10  ;;  %818 = vadd.xlane.f32.xlu0 %v817_v3  ;;  %v446_v18 = vpop.xlane.xlu0 %445  ;;  %v449_v58 = vpop.xlane.xlu1 %448 }
 0x105   : > { %5100 = vst [vmem:[#allocation2_spill] sm:$0xff] %v3825_v42  ;;  %5102 = vst [vmem:[#allocation3_spill] sm:$0xff] %v3828_v52  ;;  %v533_v34 = vmul.f32 0.0625, %v446_v18  ;;  %v534_v48 = vmul.f32 0.0625, %v449_v58  ;;  %v659_v40 = vmul.f32 %v3825_v42, %v3825_v42  ;;  %v660_v50 = vmul.f32 %v3828_v52, %v3828_v52 }
 0x107   : > { %v3837_v36 = vsub.f32 %v5103_v44, %v533_v34  ;;  %v3840_v7 = vsub.f32 %v5105_v56, %v534_v48  ;;  %v823_v10 = vsel %vm287_vm0, %v659_v40, 0.0  ;;  %v826_v3 = vsel %vm287_vm0, %v660_v50, 0.0  ;;  %v5107_v44 = vld [vmem:[#allocation6_spill] sm:$0xff]  ;;  %v5109_v48 = vld [vmem:[#allocation7_spill] sm:$0xff] }
 0x108   : > { %821 = vadd.xlane.f32.xlu1 %v820_v60  ;;  %824 = vadd.xlane.f32.xlu0 %v823_v10  ;;  %v452_v26 = vpop.xlane.xlu0 %451  ;;  %v455_v6 = vpop.xlane.xlu1 %454 }
 0x109   : > { %5104 = vst [vmem:[#allocation4_spill] sm:$0xff] %v3837_v36  ;;  %5106 = vst [vmem:[#allocation5_spill] sm:$0xff] %v3840_v7  ;;  %v535_v18 = vmul.f32 0.0625, %v452_v26  ;;  %v536_v58 = vmul.f32 0.0625, %v455_v6  ;;  %v661_v42 = vmul.f32 %v3837_v36, %v3837_v36  ;;  %v662_v34 = vmul.f32 %v3840_v7, %v3840_v7  ;;  %v1717_v7 = vld [vmem:[%s3915_s24 + $0x30] sm:$0xff] }
 0x10b   : > { %v3849_v32 = vsub.f32 %v5107_v44, %v535_v18  ;;  %v3852_v56 = vsub.f32 %v5109_v48, %v536_v58  ;;  %v829_v40 = vsel %vm287_vm0, %v661_v42, 0.0  ;;  %v832_v10 = vsel %vm287_vm0, %v662_v34, 0.0  ;;  %v5111_v44 = vld [vmem:[#allocation8_spill] sm:$0xff]  ;;  %v5113_v58 = vld [vmem:[#allocation9_spill] sm:$0xff] }
 0x10c   : > { %827 = vadd.xlane.f32.xlu1 %v826_v3  ;;  %830 = vadd.xlane.f32.xlu0 %v829_v40  ;;  %v458_v60 = vpop.xlane.xlu0 %457  ;;  %v461_v50 = vpop.xlane.xlu1 %460 }
 0x10d   : > { %5108 = vst [vmem:[#allocation6_spill] sm:$0xff] %v3849_v32  ;;  %5110 = vst [vmem:[#allocation7_spill] sm:$0xff] %v3852_v56  ;;  %v537_v26 = vmul.f32 0.0625, %v458_v60  ;;  %v538_v6 = vmul.f32 0.0625, %v461_v50  ;;  %v663_v36 = vmul.f32 %v3849_v32, %v3849_v32  ;;  %v664_v18 = vmul.f32 %v3852_v56, %v3852_v56 }
 0x10f   : > { %v3861_v28 = vsub.f32 %v5111_v44, %v537_v26  ;;  %v3864_v48 = vsub.f32 %v5113_v58, %v538_v6  ;;  %v835_v42 = vsel %vm287_vm0, %v663_v36, 0.0  ;;  %v838_v40 = vsel %vm287_vm0, %v664_v18, 0.0  ;;  %v5115_v44 = vld [vmem:[#allocation10_spill] sm:$0xff]  ;;  %v5117_v6 = vld [vmem:[#allocation11_spill] sm:$0xff] }
 0x110   : > { %833 = vadd.xlane.f32.xlu1 %v832_v10  ;;  %836 = vadd.xlane.f32.xlu0 %v835_v42  ;;  %v464_v3 = vpop.xlane.xlu0 %463  ;;  %v467_v34 = vpop.xlane.xlu1 %466 }
 0x111   : > { %5112 = vst [vmem:[#allocation8_spill] sm:$0xff] %v3861_v28  ;;  %5114 = vst [vmem:[#allocation9_spill] sm:$0xff] %v3864_v48  ;;  %v539_v60 = vmul.f32 0.0625, %v464_v3  ;;  %v540_v50 = vmul.f32 0.0625, %v467_v34  ;;  %v665_v32 = vmul.f32 %v3861_v28, %v3861_v28  ;;  %v666_v26 = vmul.f32 %v3864_v48, %v3864_v48 }
 0x113   : > { %v3873_v56 = vsub.f32 %v5115_v44, %v539_v60  ;;  %v3876_v58 = vsub.f32 %v5117_v6, %v540_v50  ;;  %v841_v36 = vsel %vm287_vm0, %v665_v32, 0.0  ;;  %v844_v42 = vsel %vm287_vm0, %v666_v26, 0.0  ;;  %v5119_v44 = vld [vmem:[#allocation12_spill] sm:$0xff]  ;;  %v5121_v50 = vld [vmem:[#allocation13_spill] sm:$0xff] }
 0x114   : > { %839 = vadd.xlane.f32.xlu1 %v838_v40  ;;  %842 = vadd.xlane.f32.xlu0 %v841_v36  ;;  %v470_v10 = vpop.xlane.xlu0 %469  ;;  %v473_v18 = vpop.xlane.xlu1 %472 }
 0x115   : > { %5116 = vst [vmem:[#allocation10_spill] sm:$0xff] %v3873_v56  ;;  %5118 = vst [vmem:[#allocation11_spill] sm:$0xff] %v3876_v58  ;;  %v541_v3 = vmul.f32 0.0625, %v470_v10  ;;  %v542_v34 = vmul.f32 0.0625, %v473_v18  ;;  %v667_v28 = vmul.f32 %v3873_v56, %v3873_v56  ;;  %v668_v60 = vmul.f32 %v3876_v58, %v3876_v58 }
 0x117   : > { %v3885_v48 = vsub.f32 %v5119_v44, %v541_v3  ;;  %v3888_v6 = vsub.f32 %v5121_v50, %v542_v34  ;;  %v847_v32 = vsel %vm287_vm0, %v667_v28, 0.0  ;;  %v850_v36 = vsel %vm287_vm0, %v668_v60, 0.0  ;;  %v5123_v44 = vld [vmem:[#allocation14_spill] sm:$0xff] }
 0x118   : > { %845 = vadd.xlane.f32.xlu1 %v844_v42  ;;  %848 = vadd.xlane.f32.xlu0 %v847_v32  ;;  %v476_v40 = vpop.xlane.xlu0 %475  ;;  %v479_v26 = vpop.xlane.xlu1 %478 }
 0x119   : > { %5120 = vst [vmem:[#allocation12_spill] sm:$0xff] %v3885_v48  ;;  %5122 = vst [vmem:[#allocation13_spill] sm:$0xff] %v3888_v6  ;;  %v543_v10 = vmul.f32 0.0625, %v476_v40  ;;  %v544_v18 = vmul.f32 0.0625, %v479_v26  ;;  %v669_v56 = vmul.f32 %v3885_v48, %v3885_v48  ;;  %v670_v3 = vmul.f32 %v3888_v6, %v3888_v6  ;;  %v1720_v48 = vld [vmem:[%s3915_s24 + $0x48] sm:$0xff] }
 0x11b   : > { %v3897_v34 = vsub.f32 %v5123_v44, %v543_v10  ;;  %v3900_v28 = vsub.f32 %v3520_v31, %v544_v18  ;;  %v853_v42 = vsel %vm287_vm0, %v669_v56, 0.0  ;;  %v856_v60 = vsel %vm287_vm0, %v670_v3, 0.0 }
 0x11c   : > { %851 = vadd.xlane.f32.xlu1 %v850_v36  ;;  %854 = vadd.xlane.f32.xlu0 %v853_v42  ;;  %v1712_v42 = vld [vmem:[%s3915_s24 + $0x8] sm:$0xff] }
 0x11d   : > { %5124 = vst [vmem:[#allocation14_spill] sm:$0xff] %v3897_v34  ;;  %5125 = vst [vmem:[#allocation36_spill] sm:$0xff] %v3900_v28  ;;  %v671_v50 = vmul.f32 %v3897_v34, %v3897_v34  ;;  %v672_v32 = vmul.f32 %v3900_v28, %v3900_v28  ;;  %v1722_v28 = vld [vmem:[%s3915_s24 + $0x58] sm:$0xff] }
 0x11f   : > { %v859_v40 = vsel %vm287_vm0, %v671_v50, 0.0  ;;  %v862_v26 = vsel %vm287_vm0, %v672_v32, 0.0 }
 0x120   : > { %857 = vadd.xlane.f32.xlu1 %v856_v60  ;;  %860 = vadd.xlane.f32.xlu0 %v859_v40  ;;  %v1711_v60 = vld [vmem:[%s3915_s24] sm:$0xff] }
 0x124   : > { %863 = vadd.xlane.f32.xlu1 %v862_v26 }
 0x12d   : > { %v675_v31 = vpop.xlane.xlu0 %674 }
 0x12e   : > { %v865_v10 = vmul.f32 0.0625, %v675_v31 }
 0x130   : > { %v929_v56 = vadd.f32 1e-06, %v865_v10  ;;  %v1713_v10 = vld [vmem:[%s3915_s24 + $0x10] sm:$0xff] }
 0x131   : > { %v678_v36 = vpop.xlane.xlu1 %677  ;;  %v681_v18 = vpop.xlane.xlu0 %680 }
 0x132   : > { %2766 = vrsqrt.f32 %v929_v56  ;;  %v866_v3 = vmul.f32 0.0625, %v678_v36  ;;  %v867_v44 = vmul.f32 0.0625, %v681_v18 }
 0x134   : > { %v930_v50 = vadd.f32 1e-06, %v866_v3  ;;  %v931_v32 = vadd.f32 1e-06, %v867_v44 }
 0x135   : > { %1782 = vperm.xlu1 %2765, %v1712_v42   ;;  %v684_v40 = vpop.xlane.xlu1 %683  ;;  %v687_v26 = vpop.xlane.xlu0 %686  ;;  %v1714_v42 = vld [vmem:[%s3915_s24 + $0x18] sm:$0xff] }
 0x136   : > { %2768 = vrsqrt.f32 %v930_v50  ;;  %v868_v31 = vmul.f32 0.0625, %v684_v40  ;;  %v869_v34 = vmul.f32 0.0625, %v687_v26  ;;  %1777 = vperm.xlu0 %2764, %v1711_v60   ;;  %v1715_v40 = vld [vmem:[%s3915_s24 + $0x20] sm:$0xff] }
 0x137   : > { %2770 = vrsqrt.f32 %v931_v32 }
 0x138   : > { %v932_v56 = vadd.f32 1e-06, %v868_v31  ;;  %v933_v3 = vadd.f32 1e-06, %v869_v34  ;;  %v1724_v31 = vld [vmem:[%s3915_s24 + $0x68] sm:$0xff] }
 0x139   : > { %1787 = vperm.xlu1 %2765, %v1713_v10   ;;  %v690_v36 = vpop.xlane.xlu1 %689  ;;  %v693_v18 = vpop.xlane.xlu0 %692 }
 0x13a   : > { %2772 = vrsqrt.f32 %v932_v56  ;;  %v870_v44 = vmul.f32 0.0625, %v690_v36  ;;  %1822 = vperm.xlu0 %2764, %v1720_v48   ;;  %v1716_v56 = vld [vmem:[%s3915_s24 + $0x28] sm:$0xff]  ;;  %v3936_v36 = vld [vmem:[%s4990_s1] ss:$0 sm:$0xff] }
 0x13b   : > { %2774 = vrsqrt.f32 %v933_v3 }
 0x13c   : > { %v934_v32 = vadd.f32 1e-06, %v870_v44  ;;  %v1726_v44 = vld [vmem:[%s3915_s24 + $0x78] sm:$0xff] }
 0x13d   : > { %1792 = vperm.xlu1 %2765, %v1714_v42   ;;  %v3923_v50 = vpop.xlane.xlu1 %695  ;;  %v3925_v60 = vpop.xlane.xlu0 %698 }
 0x13e   : > { %1832 = vperm.xlu0 %2764, %v1722_v28   ;;  %2776 = vrsqrt.f32 %v934_v32  ;;  %v5126_v32 = vld [vmem:[#allocation15_spill] sm:$0xff] }
 0x13f   : > { %v2767_v26 = vpop.eup %2766 }
 0x140   : > { %v1057_v48 = vmul.f32 %v2767_v26, %v3527_v54 }
 0x141   : > { %1797 = vperm.xlu1 %2765, %v1715_v40   ;;  %v702_v10 = vpop.xlane.xlu1 %701  ;;  %v3929_v34 = vpop.xlane.xlu0 %704 }
 0x142   : > { %1842 = vperm.xlu0 %2764, %v1724_v31   ;;  %v874_v28 = vmul.f32 0.0625, %v702_v10  ;;  %v1128_v54 = vmul.f32 %v3936_v36, %v1057_v48  ;;  %v3948_v10 = vld [vmem:[%s4991_s2] ss:$0 sm:$0xff] }
 0x143   : > { %v2769_v3 = vpop.eup %2768 }
 0x144   : > { %v2771_v42 = vpop.eup %2770  ;;  %v1058_v40 = vmul.f32 %v2769_v3, %v3537_v47  ;;  %v938_v52 = vadd.f32 1e-06, %v874_v28  ;;  %v1728_v47 = vld [vmem:[%s3915_s24 + $0x88] sm:$0xff]  ;;  %v1718_v28 = vld [vmem:[%s3915_s24 + $0x38] sm:$0xff] }
 0x145   : > { %1802 = vperm.xlu1 %2765, %v1716_v56   ;;  %v708_v6 = vpop.xlane.xlu1 %707  ;;  %v3940_v58 = vpop.xlane.xlu0 %710  ;;  %v1059_v26 = vmul.f32 %v2771_v42, %v5126_v32  ;;  %v871_v32 = vmul.f32 0.0625, %v693_v18 }
 0x146   : > { %v876_v31 = vmul.f32 0.0625, %v708_v6  ;;  %1852 = vperm.xlu0 %2764, %v1726_v44   ;;  %v1129_v56 = vmul.f32 %v3936_v36, %v1058_v40  ;;  %v3955_v6 = vadd.f32 %v3948_v10, %v1128_v54  ;;  %2778 = vrsqrt.f32 %v938_v52  ;;  %v1730_v40 = vld [vmem:[%s3915_s24 + $0x98] sm:$0xff]  ;;  %v1719_v52 = vld [vmem:[%s3915_s24 + $0x40] sm:$0xff] }
 0x147   : > { %v2773_v24 = vpop.eup %2772  ;;  %v1130_v44 = vmul.f32 %v3936_v36, %v1059_v26  ;;  %v935_v18 = vadd.f32 1e-06, %v871_v32 }
 0x148   : > { %v1060_v42 = vmul.f32 %v2773_v24, %v3540_v55  ;;  %v940_v63 = vadd.f32 1e-06, %v876_v31  ;;  %v2775_v14 = vpop.eup %2774  ;;  %v2561_v26 = vmul.f32 -1.442695, %v3955_v6 }
 0x149   : > { %1807 = vperm.xlu1 %2765, %v1717_v7   ;;  %v714_v3 = vpop.xlane.xlu1 %713  ;;  %v3952_v48 = vpop.xlane.xlu0 %716  ;;  %v3962_v7 = vadd.f32 %v3948_v10, %v1129_v56  ;;  %v3966_v55 = vadd.f32 %v3948_v10, %v1130_v44 }
 0x14a   : > { %v878_v59 = vmul.f32 0.0625, %v714_v3  ;;  %1862 = vperm.xlu0 %2764, %v1728_v47   ;;  %v1131_v24 = vmul.f32 %v3936_v36, %v1060_v42  ;;  %2780 = vrsqrt.f32 %v940_v63  ;;  %v1061_v47 = vmul.f32 %v2775_v14, %v3549_v2  ;;  %v1721_v14 = vld [vmem:[%s3915_s24 + $0x50] sm:$0xff] }
 0x14b   : > { %v2777_v56 = vpop.eup %2776  ;;  %v2562_v3 = vmul.f32 -1.442695, %v3962_v7  ;;  %v2563_v63 = vmul.f32 -1.442695, %v3966_v55 }
 0x14c   : > { %v942_v51 = vadd.f32 1e-06, %v878_v59  ;;  %v1732_v59 = vld [vmem:[%s3915_s24 + $0xa8] sm:$0xff]  ;;  %v3976_v32 = vadd.f32 %v3948_v10, %v1131_v24 }
 0x14d   : > { %1812 = vperm.xlu1 %2765, %v1718_v28   ;;  %v720_v54 = vpop.xlane.xlu1 %719  ;;  %v723_v1 = vpop.xlane.xlu0 %722  ;;  %v872_v28 = vmul.f32 0.0625, %v3923_v50  ;;  %v1062_v50 = vmul.f32 %v2777_v56, %v3552_v5 }
 0x14e   : > { %v880_v31 = vmul.f32 0.0625, %v720_v54  ;;  %1872 = vperm.xlu0 %2764, %v1730_v40   ;;  %2782 = vrsqrt.f32 %v942_v51  ;;  %v1132_v40 = vmul.f32 %v3936_v36, %v1061_v47  ;;  %v873_v51 = vmul.f32 0.0625, %v3925_v60  ;;  %v1734_v54 = vld [vmem:[%s3915_s24 + $0xb8] sm:$0xff]  ;;  %v1723_v47 = vld [vmem:[%s3915_s24 + $0x60] sm:$0xff] }
 0x14f   : > { %2784 = vpow2.f32 %v2561_v26  ;;  %v936_v26 = vadd.f32 1e-06, %v872_v28  ;;  %v1133_v60 = vmul.f32 %v3936_v36, %v1062_v50  ;;  %v879_v28 = vmul.f32 0.0625, %v3952_v48 }
 0x150   : > { %v944_v44 = vadd.f32 1e-06, %v880_v31  ;;  %2786 = vrsqrt.f32 %v935_v18  ;;  %v875_v31 = vmul.f32 0.0625, %v3929_v34  ;;  %v3987_v5 = vadd.f32 %v3948_v10, %v1132_v40  ;;  %v1725_v40 = vld [vmem:[%s3915_s24 + $0x70] sm:$0xff] }
 0x151   : > { %1817 = vperm.xlu1 %2765, %v1719_v52   ;;  %v726_v43 = vpop.xlane.xlu1 %725  ;;  %v729_v42 = vpop.xlane.xlu0 %728  ;;  %2788 = vpow2.f32 %v2562_v3  ;;  %v937_v56 = vadd.f32 1e-06, %v873_v51  ;;  %v1736_v3 = vld [vmem:[%s3915_s24 + $0xc8] sm:$0xff]  ;;  %v3996_v51 = vadd.f32 %v3948_v10, %v1133_v60  ;;  %v1727_v60 = vld [vmem:[%s3915_s24 + $0x80] sm:$0xff] }
 0x152   : > { %v882_v2 = vmul.f32 0.0625, %v726_v43  ;;  %1882 = vperm.xlu0 %2764, %v1732_v59   ;;  %2790 = vrsqrt.f32 %v944_v44  ;;  %v2564_v43 = vmul.f32 -1.442695, %v3976_v32  ;;  %v877_v59 = vmul.f32 0.0625, %v3940_v58 }
 0x153   : > { %2792 = vpow2.f32 %v2563_v63  ;;  %v2779_v34 = vpop.eup %2778  ;;  %v939_v44 = vadd.f32 1e-06, %v875_v31  ;;  %v881_v63 = vmul.f32 0.0625, %v723_v1  ;;  %v2565_v50 = vmul.f32 -1.442695, %v3987_v5 }
 0x154   : > { %v946_v52 = vadd.f32 1e-06, %v882_v2  ;;  %2794 = vrsqrt.f32 %v936_v26  ;;  %v883_v48 = vmul.f32 0.0625, %v729_v42  ;;  %v1738_v26 = vld [vmem:[%s3915_s24 + $0xd8] sm:$0xff]  ;;  %v1066_v1 = vmul.f32 %v2779_v34, %v3576_v13  ;;  %v1740_v34 = vld [vmem:[%s3915_s24 + $0xe8] sm:$0xff] }
 0x155   : > { %1827 = vperm.xlu1 %2765, %v1721_v14   ;;  %v732_v24 = vpop.xlane.xlu1 %731  ;;  %v735_v18 = vpop.xlane.xlu0 %734  ;;  %2796 = vpow2.f32 %v2564_v43  ;;  %v943_v31 = vadd.f32 1e-06, %v879_v28  ;;  %v945_v43 = vadd.f32 1e-06, %v881_v63  ;;  %v2566_v42 = vmul.f32 -1.442695, %v3996_v51 }
 0x156   : > { %1892 = vperm.xlu0 %2764, %v1734_v54   ;;  %2798 = vrsqrt.f32 %v946_v52  ;;  %v941_v54 = vadd.f32 1e-06, %v877_v59  ;;  %v884_v35 = vmul.f32 0.0625, %v732_v24  ;;  %v947_v13 = vadd.f32 1e-06, %v883_v48 }
 0x157   : > { %v2781_v58 = vpop.eup %2780  ;;  %2800 = vrsqrt.f32 %v937_v56  ;;  %v885_v59 = vmul.f32 0.0625, %v735_v18  ;;  %v1137_v28 = vmul.f32 %v3936_v36, %v1066_v1  ;;  %v1729_v18 = vld [vmem:[%s3915_s24 + $0x90] sm:$0xff] }
 0x158   : > { %2802 = vrsqrt.f32 %v939_v44  ;;  %v1068_v30 = vmul.f32 %v2781_v58, %v3588_v17 }
 0x159   : > { %1837 = vperm.xlu1 %2765, %v1723_v47   ;;  %v738_v2 = vpop.xlane.xlu1 %737  ;;  %v741_v14 = vpop.xlane.xlu0 %740  ;;  %2804 = vpow2.f32 %v2565_v50  ;;  %v949_v1 = vadd.f32 1e-06, %v885_v59 }
 0x15a   : > { %1902 = vperm.xlu0 %2764, %v1736_v3   ;;  %2806 = vrsqrt.f32 %v941_v54  ;;  %v948_v54 = vadd.f32 1e-06, %v884_v35  ;;  %v886_v48 = vmul.f32 0.0625, %v738_v2 }
 0x15b   : > { %v2783_v47 = vpop.eup %2782  ;;  %2808 = vrsqrt.f32 %v943_v31  ;;  %v1742_v31 = vld [vmem:[%s3915_s24 + $0xf8] sm:$0xff] }
 0x15c   : > { %v2785_v38 = vpop.eup %2784  ;;  %v1070_v63 = vmul.f32 %v2783_v47, %v3600_v8  ;;  %2810 = vrsqrt.f32 %v945_v43  ;;  %v4012_v8 = vadd.f32 %v3948_v10, %v1137_v28  ;;  %v887_v43 = vmul.f32 0.0625, %v741_v14  ;;  %v1731_v28 = vld [vmem:[%s3915_s24 + $0xa0] sm:$0xff] }
 0x15d   : > { %1847 = vperm.xlu1 %2765, %v1725_v40   ;;  %v744_v52 = vpop.xlane.xlu1 %743  ;;  %v747_v3 = vpop.xlane.xlu0 %746  ;;  %v1455_v50 = vadd.f32 1.0, %v2785_v38  ;;  %2812 = vpow2.f32 %v2566_v42 }
 0x15e   : > { %1912 = vperm.xlu0 %2764, %v1738_v26   ;;  %v2787_v56 = vpop.eup %2786  ;;  %v1139_v26 = vmul.f32 %v3936_v36, %v1068_v30  ;;  %2814 = vrsqrt.f32 %v947_v13  ;;  %v1141_v38 = vmul.f32 %v3936_v36, %v1070_v63 }
 0x15f   : > { %v2789_v44 = vpop.eup %2788  ;;  %v1063_v47 = vmul.f32 %v2787_v56, %v3561_v62  ;;  %2816 = vrcp.f32 %v1455_v50  ;;  %v888_v56 = vmul.f32 0.0625, %v744_v52  ;;  %v951_v50 = vadd.f32 1e-06, %v887_v43 }
 0x160   : > { %v2791_v24 = vpop.eup %2790  ;;  %2818 = vrsqrt.f32 %v948_v54  ;;  %v4021_v62 = vadd.f32 %v3948_v10, %v1139_v26 }
 0x161   : > { %1857 = vperm.xlu1 %2765, %v1727_v60   ;;  %v750_v17 = vpop.xlane.xlu1 %749  ;;  %v4006_v40 = vpop.xlane.xlu0 %752  ;;  %v1456_v60 = vadd.f32 1.0, %v2789_v44  ;;  %v1072_v35 = vmul.f32 %v2791_v24, %v3612_v25  ;;  %2820 = vrsqrt.f32 %v949_v1  ;;  %v1744_v25 = vld [vmem:[%s3915_s24 + $0x108] sm:$0xff]  ;;  %v2570_v44 = vmul.f32 -1.442695, %v4012_v8 }
 0x162   : > { %v2793_v58 = vpop.eup %2792  ;;  %1922 = vperm.xlu0 %2764, %v1740_v34   ;;  %v950_v34 = vadd.f32 1e-06, %v886_v48  ;;  %v1134_v63 = vmul.f32 %v3936_v36, %v1063_v47  ;;  %v889_v48 = vmul.f32 0.0625, %v747_v3  ;;  %v1733_v47 = vld [vmem:[%s3915_s24 + $0xb0] sm:$0xff]  ;;  %v2572_v43 = vmul.f32 -1.442695, %v4021_v62 }
 0x163   : > { %v2795_v2 = vpop.eup %2794  ;;  %v1457_v13 = vadd.f32 1.0, %v2793_v58  ;;  %2822 = vrcp.f32 %v1456_v60  ;;  %v4027_v58 = vadd.f32 %v3948_v10, %v1141_v38  ;;  %v1143_v54 = vmul.f32 %v3936_v36, %v1072_v35 }
 0x164   : > { %v2797_v59 = vpop.eup %2796  ;;  %v1064_v1 = vmul.f32 %v2795_v2, %v3564_v9  ;;  %v952_v35 = vadd.f32 1e-06, %v888_v56  ;;  %v890_v3 = vmul.f32 0.0625, %v750_v17 }
 0x165   : > { %1867 = vperm.xlu1 %2765, %v1729_v18   ;;  %v756_v30 = vpop.xlane.xlu1 %755  ;;  %v4017_v42 = vpop.xlane.xlu0 %758  ;;  %2824 = vrcp.f32 %v1457_v13  ;;  %v1458_v52 = vadd.f32 1.0, %v2797_v59  ;;  %v2574_v9 = vmul.f32 -1.442695, %v4027_v58  ;;  %v4040_v2 = vadd.f32 %v3948_v10, %v1143_v54 }
 0x166   : > { %1932 = vperm.xlu0 %2764, %v1742_v31   ;;  %v2799_v14 = vpop.eup %2798  ;;  %2826 = vrsqrt.f32 %v950_v34  ;;  %v4043_v13 = vadd.f32 %v3948_v10, %v1134_v63 }
 0x167   : > { %v2801_v24 = vpop.eup %2800  ;;  %v1074_v60 = vmul.f32 %v2799_v14, %v3624_v29  ;;  %2828 = vpow2.f32 %v2570_v44  ;;  %v953_v29 = vadd.f32 1e-06, %v889_v48  ;;  %v5128_v14 = vld [vmem:[#allocation16_spill] sm:$0xff]  ;;  %v892_v44 = vmul.f32 0.0625, %v756_v30 }
 0x168   : > { %v2803_v31 = vpop.eup %2802  ;;  %2830 = vrsqrt.f32 %v951_v50  ;;  %5127 = vst [vmem:[#allocation15_spill] sm:$0xff] %v4043_v13  ;;  %v954_v48 = vadd.f32 1e-06, %v890_v3  ;;  %v2576_v30 = vmul.f32 -1.442695, %v4040_v2 }
 0x169   : > { %1877 = vperm.xlu1 %2765, %v1731_v28   ;;  %v762_v18 = vpop.xlane.xlu1 %761  ;;  %v4030_v26 = vpop.xlane.xlu0 %764  ;;  %v1065_v28 = vmul.f32 %v2801_v24, %v3573_v0  ;;  %2832 = vrcp.f32 %v1458_v52  ;;  %v1135_v0 = vmul.f32 %v3936_v36, %v1064_v1  ;;  %v1067_v56 = vmul.f32 %v2803_v31, %v5128_v14  ;;  %v1735_v24 = vld [vmem:[%s3915_s24 + $0xc0] sm:$0xff]  ;;  %v1750_v14 = vld [vmem:[%s3915_s24 + $0x138] sm:$0xff] }
 0x16a   : > { %1942 = vperm.xlu0 %2764, %v1744_v25   ;;  %v2805_v38 = vpop.eup %2804  ;;  %2834 = vpow2.f32 %v2572_v43  ;;  %v1145_v50 = vmul.f32 %v3936_v36, %v1074_v60  ;;  %v894_v31 = vmul.f32 0.0625, %v762_v18  ;;  %v956_v3 = vadd.f32 1e-06, %v892_v44 }
 0x16b   : > { %v2807_v20 = vpop.eup %2806  ;;  %v1459_v63 = vadd.f32 1.0, %v2805_v38  ;;  %2836 = vrsqrt.f32 %v952_v35  ;;  %v1136_v52 = vmul.f32 %v3936_v36, %v1065_v28  ;;  %v2567_v38 = vmul.f32 -1.442695, %v4043_v13  ;;  %v1737_v28 = vld [vmem:[%s3915_s24 + $0xd0] sm:$0xff] }
 0x16c   : > { %v2809_v59 = vpop.eup %2808  ;;  %2838 = vpow2.f32 %v2574_v9  ;;  %v4068_v9 = vadd.f32 %v3948_v10, %v1145_v50 }
 0x16d   : > { %1887 = vperm.xlu1 %2765, %v1733_v47   ;;  %v768_v34 = vpop.xlane.xlu1 %767  ;;  %v4045_v17 = vpop.xlane.xlu0 %770  ;;  %v891_v47 = vmul.f32 0.0625, %v4006_v40  ;;  %2840 = vrsqrt.f32 %v953_v29  ;;  %v4062_v40 = vadd.f32 %v3948_v10, %v1135_v0  ;;  %v893_v29 = vmul.f32 0.0625, %v4017_v42 }
 0x16e   : > { %v4049_v25 = vpop.eup %2810  ;;  %1952 = vperm.xlu0 %2764, %v1746_v27   ;;  %v1069_v27 = vmul.f32 %v2807_v20, %v3597_v21  ;;  %2842 = vrcp.f32 %v1459_v63  ;;  %5130 = vst [vmem:[#allocation37_spill] sm:$0xff] %v4068_v9  ;;  %v1138_v21 = vmul.f32 %v3936_v36, %v1067_v56  ;;  %v4074_v0 = vadd.f32 %v3948_v10, %v1136_v52 }
 0x16f   : > { %v2813_v54 = vpop.eup %2812  ;;  %5129 = vst [vmem:[#allocation16_spill] sm:$0xff] %v4062_v40  ;;  %2844 = vrsqrt.f32 %v954_v48  ;;  %v955_v18 = vadd.f32 1e-06, %v891_v47  ;;  %v958_v56 = vadd.f32 1e-06, %v894_v31  ;;  %v895_v48 = vmul.f32 0.0625, %v4030_v26 }
 0x170   : > { %v4056_v1 = vpop.eup %2814  ;;  %5131 = vst [vmem:[#allocation38_spill] sm:$0xff] %v4074_v0  ;;  %v1460_v44 = vadd.f32 1.0, %v2813_v54  ;;  %2846 = vpow2.f32 %v2576_v30  ;;  %v1140_v63 = vmul.f32 %v3936_v36, %v1069_v27  ;;  %v1071_v52 = vmul.f32 %v2809_v59, %v3609_v46 }
 0x171   : > { %1897 = vperm.xlu1 %2765, %v1735_v24   ;;  %v774_v43 = vpop.xlane.xlu1 %773  ;;  %v777_v60 = vpop.xlane.xlu0 %776  ;;  %v2578_v54 = vmul.f32 -1.442695, %v4068_v9  ;;  %v4089_v27 = vadd.f32 %v3948_v10, %v1138_v21  ;;  %v957_v31 = vadd.f32 1e-06, %v893_v29 }
 0x172   : > { %v4064_v35 = vpop.eup %2816  ;;  %1962 = vperm.xlu0 %2764, %v1748_v19   ;;  %v896_v19 = vmul.f32 0.0625, %v768_v34  ;;  %2848 = vpow2.f32 %v2567_v38  ;;  %v1739_v34 = vld [vmem:[%s3915_s24 + $0xe0] sm:$0xff]  ;;  %v2568_v38 = vmul.f32 -1.442695, %v4062_v40  ;;  %v898_v21 = vmul.f32 0.0625, %v774_v43 }
 0x173   : > { %v2819_v20 = vpop.eup %2818  ;;  %2850 = vrsqrt.f32 %v956_v3  ;;  %5132 = vst [vmem:[#allocation39_spill] sm:$0xff] %v4089_v27  ;;  %v897_v3 = vmul.f32 0.0625, %v4045_v17  ;;  %v1142_v29 = vmul.f32 %v3936_v36, %v1071_v52  ;;  %v1741_v17 = vld [vmem:[%s3915_s24 + $0xf0] sm:$0xff] }
 0x174   : > { %v4076_v24 = vpop.eup %2820  ;;  %v1076_v30 = vmul.f32 %v2819_v20, %v3636_v33  ;;  %2852 = vrsqrt.f32 %v955_v18  ;;  %v960_v59 = vadd.f32 1e-06, %v896_v19  ;;  %v959_v33 = vadd.f32 1e-06, %v895_v48 }
 0x175   : > { %v4079_v50 = vpop.eup %2822  ;;  %1907 = vperm.xlu1 %2765, %v1737_v28   ;;  %v780_v42 = vpop.xlane.xlu1 %779  ;;  %v1752_v28 = vld [vmem:[%s3915_s24 + $0x148] sm:$0xff]  ;;  %2854 = vrcp.f32 %v1460_v44  ;;  %v899_v48 = vmul.f32 0.0625, %v777_v60 }
 0x176   : > { %v783_v47 = vpop.xlane.xlu0 %782  ;;  %v4083_v22 = vpop.eup %2824  ;;  %1972 = vperm.xlu0 %2764, %v1750_v14   ;;  %v4095_v14 = vadd.f32 %v3948_v10, %v1140_v63  ;;  %2856 = vrsqrt.f32 %v958_v56  ;;  %v1147_v44 = vmul.f32 %v3936_v36, %v1076_v30  ;;  %v4109_v63 = vmul.f32 -1.442695, %v4074_v0 }
 0x177   : > { %v2827_v26 = vpop.eup %2826  ;;  %2858 = vpow2.f32 %v2578_v54  ;;  %v4112_v56 = vmul.f32 -1.442695, %v4089_v27  ;;  %v1073_v30 = vmul.f32 %v4049_v25, %v3621_v16  ;;  %v962_v27 = vadd.f32 1e-06, %v898_v21 }
 0x178   : > { %v2829_v46 = vpop.eup %2828  ;;  %5133 = vst [vmem:[#allocation40_spill] sm:$0xff] %v4095_v14  ;;  %2860 = vrsqrt.f32 %v957_v31  ;;  %v1078_v52 = vmul.f32 %v2827_v26, %v3648_v37  ;;  %v4117_v54 = vmul.f32 -1.442695, %v4095_v14  ;;  %v900_v31 = vmul.f32 0.0625, %v780_v42 }
 0x179   : > { %v4097_v9 = vpop.eup %2830  ;;  %1917 = vperm.xlu1 %2765, %v1739_v34   ;;  %v4099_v20 = vpop.xlane.xlu1 %785  ;;  %v1754_v34 = vld [vmem:[%s3915_s24 + $0x158] sm:$0xff]  ;;  %v1464_v40 = vadd.f32 1.0, %v2829_v46  ;;  %2862 = vrsqrt.f32 %v960_v59  ;;  %v4126_v37 = vadd.f32 %v3948_v10, %v1142_v29  ;;  %v1743_v59 = vld [vmem:[%s3915_s24 + $0x100] sm:$0xff]  ;;  %v4133_v16 = vmul.f32 %v4064_v35, %v3955_v6 }
 0x17a   : > { %v4101_v18 = vpop.xlane.xlu0 %788  ;;  %v4104_v19 = vpop.eup %2832  ;;  %1982 = vperm.xlu0 %2764, %v1752_v28   ;;  %v961_v28 = vadd.f32 1e-06, %v897_v3  ;;  %2864 = vrsqrt.f32 %v959_v33  ;;  %v4136_v42 = vadd.f32 %v3948_v10, %v1147_v44  ;;  %v963_v33 = vadd.f32 1e-06, %v899_v48 }
 0x17b   : > { %v2835_v43 = vpop.eup %2834  ;;  %5134 = vst [vmem:[#allocation41_spill] sm:$0xff] %v4126_v37  ;;  %2866 = vpow2.f32 %v2568_v38  ;;  %v901_v21 = vmul.f32 0.0625, %v783_v47  ;;  %v1149_v29 = vmul.f32 %v3936_v36, %v1078_v52  ;;  %v1144_v6 = vmul.f32 %v3936_v36, %v1073_v30 }
 0x17c   : > { %v2837_v11 = vpop.eup %2836  ;;  %v1466_v25 = vadd.f32 1.0, %v2835_v43  ;;  %2868 = vrcp.f32 %v1464_v40  ;;  %v964_v38 = vadd.f32 1e-06, %v900_v31  ;;  %v4148_v40 = vmul.f32 %v4079_v50, %v3962_v7 }
 0x17d   : > { %v2839_v0 = vpop.eup %2838  ;;  %1927 = vperm.xlu1 %2765, %v1741_v17   ;;  %v4121_v60 = vpop.xlane.xlu1 %791  ;;  %v1756_v17 = vld [vmem:[%s3915_s24 + $0x168] sm:$0xff]  ;;  %2870 = vrsqrt.f32 %v961_v28  ;;  %v1080_v13 = vmul.f32 %v2837_v11, %v3660_v41  ;;  %v4151_v43 = vmul.f32 -1.442695, %v4126_v37  ;;  %v1745_v41 = vld [vmem:[%s3915_s24 + $0x110] sm:$0xff]  ;;  %v4156_v11 = vmul.f32 %v4083_v22, %v3966_v55  ;;  %v1758_v28 = vld [vmem:[%s3915_s24 + $0x178] sm:$0xff] }
 0x17e   : > { %v4123_v46 = vpop.xlane.xlu0 %794  ;;  %v4128_v26 = vpop.eup %2840  ;;  %1992 = vperm.xlu0 %2764, %v1754_v34   ;;  %v1468_v34 = vadd.f32 1.0, %v2839_v0  ;;  %2872 = vrsqrt.f32 %v962_v27  ;;  %v2580_v27 = vmul.f32 -1.442695, %v4136_v42  ;;  %v1075_v48 = vmul.f32 %v4056_v1, %v3633_v39  ;;  %v1768_v37 = vld [vmem:[%s3915_s24 + $0x1c8] sm:$0xff] }
 0x17f   : > { %v2843_v3 = vpop.eup %2842  ;;  %2874 = vrcp.f32 %v1466_v25  ;;  %v965_v7 = vadd.f32 1e-06, %v901_v21  ;;  %v902_v50 = vmul.f32 0.0625, %v4099_v20  ;;  %v4164_v30 = vadd.f32 %v3948_v10, %v1149_v29  ;;  %v1747_v29 = vld [vmem:[%s3915_s24 + $0x120] sm:$0xff] }
 0x180   : > { %v2845_v14 = vpop.eup %2844  ;;  %2876 = vrsqrt.f32 %v963_v33  ;;  %v1151_v55 = vmul.f32 %v3936_v36, %v1080_v13  ;;  %v903_v1 = vmul.f32 0.0625, %v4101_v18  ;;  %v4181_v13 = vmul.f32 %v4104_v19, %v3976_v32 }
 0x181   : > { %v2847_v35 = vpop.eup %2846  ;;  %1937 = vperm.xlu1 %2765, %v1743_v59   ;;  %v4142_v44 = vpop.xlane.xlu1 %797  ;;  %2878 = vrcp.f32 %v1468_v34  ;;  %v4170_v59 = vadd.f32 %v3948_v10, %v1144_v6  ;;  %v1082_v21 = vmul.f32 %v2845_v14, %v3672_v45  ;;  %v1146_v18 = vmul.f32 %v3936_v36, %v1075_v48 }
 0x182   : > { %v4144_v47 = vpop.xlane.xlu0 %800  ;;  %v2849_v0 = vpop.eup %2848  ;;  %2002 = vperm.xlu0 %2764, %v1756_v17   ;;  %v1470_v22 = vadd.f32 1.0, %v2847_v35  ;;  %2880 = vrsqrt.f32 %v964_v38  ;;  %v966_v35 = vadd.f32 1e-06, %v902_v50  ;;  %v904_v38 = vmul.f32 0.0625, %v4121_v60 }
 0x183   : > { %v2851_v52 = vpop.eup %2850  ;;  %5135 = vst [vmem:[#allocation42_spill] sm:$0xff] %v4170_v59  ;;  %v1461_v33 = vadd.f32 1.0, %v2849_v0  ;;  %2882 = vpow2.f32 %v2580_v27  ;;  %v1760_v0 = vld [vmem:[%s3915_s24 + $0x188] sm:$0xff]  ;;  %v4188_v45 = vmul.f32 %v2843_v3, %v3987_v5  ;;  %v2582_v32 = vmul.f32 -1.442695, %v4164_v30 }
 0x184   : > { %v4166_v31 = vpop.eup %2852  ;;  %v1084_v34 = vmul.f32 %v2851_v52, %v3684_v49  ;;  %2884 = vrsqrt.f32 %v965_v7  ;;  %v4194_v19 = vadd.f32 %v3948_v10, %v1151_v55  ;;  %v4197_v49 = vmul.f32 -1.442695, %v4170_v59  ;;  %v1749_v7 = vld [vmem:[%s3915_s24 + $0x130] sm:$0xff] }
 0x185   : > { %v2855_v39 = vpop.eup %2854  ;;  %1947 = vperm.xlu1 %2765, %v1745_v41   ;;  %v4173_v20 = vpop.xlane.xlu1 %803  ;;  %2886 = vrcp.f32 %v1470_v22  ;;  %v967_v27 = vadd.f32 1e-06, %v903_v1  ;;  %v905_v60 = vmul.f32 0.0625, %v4123_v46  ;;  %v1153_v48 = vmul.f32 %v3936_v36, %v1082_v21  ;;  %v1762_v1 = vld [vmem:[%s3915_s24 + $0x198] sm:$0xff] }
 0x186   : > { %v4175_v25 = vpop.xlane.xlu0 %806  ;;  %v2857_v17 = vpop.eup %2856  ;;  %2012 = vperm.xlu0 %2764, %v1758_v28   ;;  %2888 = vrcp.f32 %v1461_v33  ;;  %v1155_v28 = vmul.f32 %v3936_v36, %v1084_v34  ;;  %v968_v55 = vadd.f32 1e-06, %v904_v38  ;;  %v1077_v33 = vmul.f32 %v4076_v24, %v3645_v23 }
 0x187   : > { %v2859_v6 = vpop.eup %2858  ;;  %2890 = vpow2.f32 %v4109_v63  ;;  %v1086_v46 = vmul.f32 %v2857_v17, %v3696_v53  ;;  %v1079_v53 = vmul.f32 %v4097_v9, %v3657_v15  ;;  %v969_v34 = vadd.f32 1e-06, %v905_v60 }
 0x188   : > { %v4190_v14 = vpop.eup %2860  ;;  %v1472_v50 = vadd.f32 1.0, %v2859_v6  ;;  %2892 = vrsqrt.f32 %v966_v35  ;;  %v906_v6 = vmul.f32 0.0625, %v4142_v44  ;;  %v4228_v23 = vmul.f32 %v2855_v39, %v3996_v51  ;;  %v1751_v44 = vld [vmem:[%s3915_s24 + $0x140] sm:$0xff] }
 0x189   : > { %v2863_v41 = vpop.eup %2862  ;;  %1957 = vperm.xlu1 %2765, %v1747_v29   ;;  %v4200_v5 = vpop.xlane.xlu1 %809  ;;  %v4213_v29 = vadd.f32 %v3948_v10, %v1146_v18  ;;  %2894 = vpow2.f32 %v2582_v32  ;;  %v4231_v24 = vadd.f32 %v3948_v10, %v1153_v48  ;;  %v4235_v9 = vadd.f32 %v3948_v10, %v1155_v28  ;;  %v1764_v32 = vld [vmem:[%s3915_s24 + $0x1a8] sm:$0xff] }
 0x18a   : > { %v4202_v3 = vpop.xlane.xlu0 %812  ;;  %v4205_v52 = vpop.eup %2864  ;;  %2022 = vperm.xlu0 %2764, %v1760_v0   ;;  %v1088_v63 = vmul.f32 %v2863_v41, %v3708_v57  ;;  %2896 = vrsqrt.f32 %v967_v27  ;;  %v1157_v38 = vmul.f32 %v3936_v36, %v1086_v46  ;;  %v2584_v41 = vmul.f32 -1.442695, %v4194_v19 }
 0x18b   : > { %v2867_v22 = vpop.eup %2866  ;;  %5136 = vst [vmem:[#allocation43_spill] sm:$0xff] %v4213_v29  ;;  %2898 = vrcp.f32 %v1472_v50  ;;  %5137 = vst [vmem:[#allocation44_spill] sm:$0xff] %v4235_v9  ;;  %v4241_v51 = vmul.f32 -1.442695, %v4213_v29  ;;  %v1148_v39 = vmul.f32 %v3936_v36, %v1077_v33  ;;  %v970_v60 = vadd.f32 1e-06, %v906_v6 }
 0x18c   : > { %v2869_v21 = vpop.eup %2868  ;;  %v1462_v15 = vadd.f32 1.0, %v2867_v22  ;;  %2900 = vrsqrt.f32 %v968_v55  ;;  %v907_v48 = vmul.f32 0.0625, %v4144_v47  ;;  %v1150_v50 = vmul.f32 %v3936_v36, %v1079_v53  ;;  %v1753_v6 = vld [vmem:[%s3915_s24 + $0x150] sm:$0xff]  ;;  %v1766_v29 = vld [vmem:[%s3915_s24 + $0x1b8] sm:$0xff] }
 0x18d   : > { %v4221_v17 = vpop.eup %2870  ;;  %1967 = vperm.xlu1 %2765, %v1749_v7   ;;  %v4223_v18 = vpop.xlane.xlu1 %815  ;;  %v1159_v7 = vmul.f32 %v3936_v36, %v1088_v63  ;;  %2902 = vrsqrt.f32 %v969_v34  ;;  %v908_v46 = vmul.f32 0.0625, %v4173_v20  ;;  %v4260_v63 = vmul.f32 %v2869_v21, %v4012_v8 }
 0x18e   : > { %v4225_v35 = vpop.xlane.xlu0 %818  ;;  %v2873_v57 = vpop.eup %2872  ;;  %2032 = vperm.xlu0 %2764, %v1762_v1   ;;  %v4255_v1 = vmul.f32 -1.442695, %v4231_v24  ;;  %2904 = vrcp.f32 %v1462_v15  ;;  %v4263_v53 = vmul.f32 -1.442695, %v4235_v9  ;;  %v4266_v20 = vadd.f32 %v3948_v10, %v1157_v38 }
 0x18f   : > { %v2875_v0 = vpop.eup %2874  ;;  %v1090_v33 = vmul.f32 %v2873_v57, %v3720_v61  ;;  %2906 = vpow2.f32 %v4112_v56  ;;  %v4275_v61 = vadd.f32 %v3948_v10, %v1148_v39  ;;  %v971_v21 = vadd.f32 1e-06, %v907_v48  ;;  %v1755_v48 = vld [vmem:[%s3915_s24 + $0x160] sm:$0xff] }
 0x190   : > { %v4244_v27 = vpop.eup %2876  ;;  %5138 = vst [vmem:[#allocation45_spill] sm:$0xff] %v4266_v20  ;;  %v4271_v59 = vmul.f32 %v2875_v0, %v4021_v62  ;;  %2908 = vrsqrt.f32 %v970_v60  ;;  %v4280_v57 = vadd.f32 %v3948_v10, %v1159_v7  ;;  %v4283_v15 = vadd.f32 %v3948_v10, %v1150_v50 }
 0x191   : > { %v2879_v28 = vpop.eup %2878  ;;  %1977 = vperm.xlu1 %2765, %v1751_v44   ;;  %v4250_v22 = vpop.xlane.xlu1 %821  ;;  %v909_v44 = vmul.f32 0.0625, %v4175_v25  ;;  %5139 = vst [vmem:[#allocation46_spill] sm:$0xff] %v4275_v61  ;;  %v972_v38 = vadd.f32 1e-06, %v908_v46  ;;  %v910_v62 = vmul.f32 0.0625, %v4200_v5  ;;  %2910 = vpow2.f32 %v2584_v41 }
 0x192   : > { %v4252_v55 = vpop.xlane.xlu0 %824  ;;  %v2881_v47 = vpop.eup %2880  ;;  %2042 = vperm.xlu0 %2764, %v1764_v32   ;;  %5140 = vst [vmem:[#allocation47_spill] sm:$0xff] %v4280_v57  ;;  %5141 = vst [vmem:[#allocation48_spill] sm:$0xff] %v4283_v15  ;;  %v1161_v32 = vmul.f32 %v3936_v36, %v1090_v33  ;;  %v4294_v50 = vmul.f32 -1.442695, %v4266_v20  ;;  %v1081_v5 = vmul.f32 %v4128_v26, %v3669_v12  ;;  %v911_v9 = vmul.f32 0.0625, %v4202_v3 }
 0x193   : > { %v2883_v34 = vpop.eup %2882  ;;  %v1092_v39 = vmul.f32 %v2881_v47, %v3732_v4  ;;  %2912 = vpow2.f32 %v4117_v54  ;;  %v4302_v4 = vmul.f32 -1.442695, %v4275_v61  ;;  %v4305_v41 = vmul.f32 %v2879_v28, %v4027_v58 }
 0x194   : > { %v4277_v8 = vpop.eup %2884  ;;  %v1474_v7 = vadd.f32 1.0, %v2883_v34  ;;  %2914 = vrsqrt.f32 %v971_v21  ;;  %v4308_v33 = vmul.f32 -1.442695, %v4280_v57  ;;  %v4311_v12 = vmul.f32 -1.442695, %v4283_v15  ;;  %v1757_v21 = vld [vmem:[%s3915_s24 + $0x170] sm:$0xff] }
 0x195   : > { %v2887_v25 = vpop.eup %2886  ;;  %1987 = vperm.xlu1 %2765, %v1753_v6   ;;  %v4286_v56 = vpop.xlane.xlu1 %827  ;;  %v973_v6 = vadd.f32 1e-06, %v909_v44  ;;  %2916 = vrsqrt.f32 %v972_v38  ;;  %v974_v3 = vadd.f32 1e-06, %v910_v62  ;;  %v4318_v34 = vadd.f32 %v3948_v10, %v1161_v32  ;;  %v1770_v57 = vld [vmem:[%s3915_s24 + $0x1d8] sm:$0xff] }
 0x196   : > { %v4288_v0 = vpop.xlane.xlu0 %830  ;;  %v2889_v60 = vpop.eup %2888  ;;  %2052 = vperm.xlu0 %2764, %v1766_v29   ;;  %v1163_v58 = vmul.f32 %v3936_v36, %v1092_v39  ;;  %v912_v44 = vmul.f32 0.0625, %v4223_v18  ;;  %2918 = vrcp.f32 %v1474_v7  ;;  %v1152_v62 = vmul.f32 %v3936_v36, %v1081_v5  ;;  %v5143_v18 = vld [vmem:[#allocation15_spill] sm:$0xff] }
 0x197   : > { %v2891_v46 = vpop.eup %2890  ;;  %5142 = vst [vmem:[#allocation49_spill] sm:$0xff] %v4318_v34  ;;  %2920 = vrsqrt.f32 %v973_v6  ;;  %v975_v15 = vadd.f32 1e-06, %v911_v9  ;;  %v913_v61 = vmul.f32 0.0625, %v4225_v35  ;;  %v4329_v32 = vmul.f32 %v2887_v25, %v4040_v2 }
 0x198   : > { %v2893_v29 = vpop.eup %2892  ;;  %v1463_v38 = vadd.f32 1.0, %v2891_v46  ;;  %v914_v20 = vmul.f32 0.0625, %v4250_v22  ;;  %2922 = vpow2.f32 %v4255_v1  ;;  %v4341_v2 = vmul.f32 -1.442695, %v4318_v34  ;;  %v5145_v22 = vld [vmem:[#allocation23_spill] sm:$0xff]  ;;  %v1759_v46 = vld [vmem:[%s3915_s24 + $0x180] sm:$0xff] }
 0x199   : > { %v2895_v26 = vpop.eup %2894  ;;  %1997 = vperm.xlu1 %2765, %v1755_v48   ;;  %v4313_v54 = vpop.xlane.xlu1 %833  ;;  %2924 = vrsqrt.f32 %v974_v3  ;;  %v4344_v9 = vadd.f32 %v3948_v10, %v1163_v58  ;;  %v1094_v25 = vmul.f32 %v2893_v29, %v5145_v22  ;;  %v976_v5 = vadd.f32 1e-06, %v912_v44  ;;  %v5149_v34 = vld [vmem:[#allocation25_spill] sm:$0xff] }
 0x19a   : > { %v4315_v47 = vpop.xlane.xlu0 %836  ;;  %v4321_v28 = vpop.eup %2896  ;;  %2062 = vperm.xlu0 %2764, %v1768_v37   ;;  %v4333_v37 = vmul.f32 %v2889_v60, %v5143_v18  ;;  %v1476_v7 = vadd.f32 1.0, %v2895_v26  ;;  %v915_v1 = vmul.f32 0.0625, %v4252_v55  ;;  %2926 = vrcp.f32 %v1463_v38  ;;  %v5148_v18 = vld [vmem:[#allocation17_spill] sm:$0xff] }
 0x19b   : > { %v2899_v48 = vpop.eup %2898  ;;  %5144 = vst [vmem:[#allocation15_spill] sm:$0xff] %v4344_v9  ;;  %v4352_v6 = vadd.f32 %v3948_v10, %v1152_v62  ;;  %2928 = vrsqrt.f32 %v975_v15  ;;  %v977_v3 = vadd.f32 1e-06, %v913_v61  ;;  %v1083_v58 = vmul.f32 %v4166_v31, %v5148_v18 }
 0x19c   : > { %v2901_v39 = vpop.eup %2900  ;;  %v916_v55 = vmul.f32 0.0625, %v4286_v56  ;;  %2930 = vrcp.f32 %v1476_v7  ;;  %v917_v38 = vmul.f32 0.0625, %v4288_v0  ;;  %v4369_v31 = vmul.f32 -1.442695, %v4344_v9  ;;  %v1774_v7 = vld [vmem:[%s3915_s24 + $0x1f8] sm:$0xff] }
 0x19d   : > { %2007 = vperm.xlu1 %2765, %v1757_v21   ;;  %v4336_v36 = vpop.xlane.xlu1 %839  ;;  %v4347_v60 = vpop.eup %2902  ;;  %5147 = vst [vmem:[#allocation50_spill] sm:$0xff] %v4352_v6  ;;  %v1772_v21 = vld [vmem:[%s3915_s24 + $0x1e8] sm:$0xff]  ;;  %v1096_v29 = vmul.f32 %v2901_v39, %v5149_v34  ;;  %2932 = vpow2.f32 %v4151_v43  ;;  %v979_v0 = vadd.f32 1e-06, %v915_v1  ;;  %v1761_v34 = vld [vmem:[%s3915_s24 + $0x190] sm:$0xff] }
 0x19e   : > { %v4338_v35 = vpop.xlane.xlu0 %842  ;;  %5146 = vst [vmem:[#allocation23_spill] sm:$0xff] %v4347_v60  ;;  %2072 = vperm.xlu0 %2764, %v1770_v57   ;;  %v2905_v26 = vpop.eup %2904  ;;  %v978_v60 = vadd.f32 1e-06, %v914_v20  ;;  %v5150_v57 = vld [vmem:[#allocation37_spill] sm:$0xff]  ;;  %v4374_v20 = vld [vmem:[%s4990_s1] ss:$0 sm:$0xff]  ;;  %2934 = vrsqrt.f32 %v976_v5 }
 0x19f   : > { %v2907_v22 = vpop.eup %2906  ;;  %v4360_v44 = vmul.f32 %v2899_v48, %v5150_v57  ;;  %v1165_v56 = vmul.f32 %v4374_v20, %v1094_v25  ;;  %v4379_v62 = vmul.f32 -1.442695, %v4352_v6  ;;  %v5152_v48 = vld [vmem:[#allocation18_spill] sm:$0xff]  ;;  %2936 = vrsqrt.f32 %v977_v3  ;;  %v5153_v5 = vld [vmem:[#allocation27_spill] sm:$0xff] }
 0x1a0   : > { %v2909_v10 = vpop.eup %2908  ;;  %v1085_v43 = vmul.f32 %v4190_v14, %v5152_v48  ;;  %v1154_v18 = vmul.f32 %v4374_v20, %v1083_v58  ;;  %v1167_v57 = vmul.f32 %v4374_v20, %v1096_v29  ;;  %2938 = vrsqrt.f32 %v978_v60  ;;  %v4398_v60 = vld [vmem:[%s4991_s2] ss:$0 sm:$0xff] }
 0x1a1   : > { %5151 = vst [vmem:[#allocation17_spill] sm:$0xff] %v4360_v44  ;;  %2017 = vperm.xlu1 %2765, %v1759_v46   ;;  %v4363_v61 = vpop.xlane.xlu1 %845  ;;  %v2911_v39 = vpop.eup %2910  ;;  %v1465_v46 = vadd.f32 1.0, %v2907_v22  ;;  %v980_v25 = vadd.f32 1e-06, %v916_v55  ;;  %v1098_v1 = vmul.f32 %v2909_v10, %v5153_v5  ;;  %v981_v14 = vadd.f32 1e-06, %v917_v38 }
 0x1a2   : > { %v4365_v15 = vpop.xlane.xlu0 %848  ;;  %2082 = vperm.xlu0 %2764, %v1772_v21   ;;  %v2913_v9 = vpop.eup %2912  ;;  %v5154_v21 = vld [vmem:[#allocation19_spill] sm:$0xff]  ;;  %v918_v3 = vmul.f32 0.0625, %v4313_v54  ;;  %2940 = vpow2.f32 %v4263_v53  ;;  %v4401_v58 = vadd.f32 %v4398_v60, %v1165_v56  ;;  %v1763_v55 = vld [vmem:[%s3915_s24 + $0x1a0] sm:$0xff]  ;;  %v1478_v54 = vadd.f32 1.0, %v2911_v39  ;;  %v5157_v53 = vld [vmem:[#allocation16_spill] sm:$0xff] }
 0x1a3   : > { %v1087_v6 = vmul.f32 %v4205_v52, %v5154_v21  ;;  %v4389_v44 = vpop.eup %2914  ;;  %2942 = vrsqrt.f32 %v979_v0  ;;  %v919_v52 = vmul.f32 0.0625, %v4315_v47  ;;  %v1156_v10 = vmul.f32 %v4374_v20, %v1085_v43 }
 0x1a4   : > { %5155 = vst [vmem:[#allocation25_spill] sm:$0xff] %v4389_v44  ;;  %5156 = vst [vmem:[#allocation37_spill] sm:$0xff] %v4401_v58  ;;  %v2917_v29 = vpop.eup %2916  ;;  %v4409_v48 = vmul.f32 %v2905_v26, %v5157_v53  ;;  %2944 = vrcp.f32 %v1465_v46  ;;  %v1467_v5 = vadd.f32 1.0, %v2913_v9  ;;  %v4412_v56 = vadd.f32 %v4398_v60, %v1154_v18  ;;  %v5161_v18 = vld [vmem:[#allocation29_spill] sm:$0xff] }
 0x1a5   : > { %2027 = vperm.xlu1 %2765, %v1761_v34   ;;  %v4392_v22 = vpop.xlane.xlu1 %851  ;;  %v2919_v38 = vpop.eup %2918  ;;  %2946 = vrsqrt.f32 %v980_v25  ;;  %v4417_v47 = vadd.f32 %v4398_v60, %v1167_v57  ;;  %v1169_v43 = vmul.f32 %v4374_v20, %v1098_v1  ;;  %v1158_v39 = vmul.f32 %v4374_v20, %v1087_v6  ;;  %v1765_v25 = vld [vmem:[%s3915_s24 + $0x1b0] sm:$0xff] }
 0x1a6   : > { %2092 = vperm.xlu0 %2764, %v1774_v7   ;;  %v4406_v34 = vpop.xlane.xlu0 %854  ;;  %5158 = vst [vmem:[#allocation18_spill] sm:$0xff] %v4412_v56  ;;  %v4414_v0 = vpop.eup %2920  ;;  %2948 = vrsqrt.f32 %v981_v14  ;;  %v982_v26 = vadd.f32 1e-06, %v918_v3  ;;  %v920_v46 = vmul.f32 0.0625, %v4336_v36  ;;  %v1100_v21 = vmul.f32 %v2917_v29, %v5161_v18 }
 0x1a7   : > { %5159 = vst [vmem:[#allocation27_spill] sm:$0xff] %v4414_v0  ;;  %5160 = vst [vmem:[#allocation19_spill] sm:$0xff] %v4417_v47  ;;  %v2923_v7 = vpop.eup %2922  ;;  %v983_v0 = vadd.f32 1e-06, %v919_v52  ;;  %2950 = vrcp.f32 %v1478_v54  ;;  %v4427_v57 = vmul.f32 -1.442695, %v4401_v58  ;;  %v4430_v1 = vadd.f32 %v4398_v60, %v1156_v10 }
 0x1a8   : > { %v2925_v53 = vpop.eup %2924  ;;  %v921_v14 = vmul.f32 0.0625, %v4338_v35  ;;  %v4434_v36 = vmul.f32 %v2919_v38, %v4136_v42  ;;  %2952 = vrcp.f32 %v1467_v5  ;;  %v4437_v3 = vmul.f32 -1.442695, %v4412_v56  ;;  %v5166_v10 = vld [vmem:[#allocation20_spill] sm:$0xff]  ;;  %v1767_v58 = vld [vmem:[%s3915_s24 + $0x1c0] sm:$0xff] }
 0x1a9   : > { %2037 = vperm.xlu1 %2765, %v1763_v55   ;;  %v4422_v9 = vpop.xlane.xlu1 %857  ;;  %5162 = vst [vmem:[#allocation16_spill] sm:$0xff] %v4430_v1  ;;  %v2927_v6 = vpop.eup %2926  ;;  %v1480_v52 = vadd.f32 1.0, %v2923_v7  ;;  %v4442_v55 = vadd.f32 %v4398_v60, %v1169_v43  ;;  %v4445_v54 = vadd.f32 %v4398_v60, %v1158_v39  ;;  %v1089_v35 = vmul.f32 %v4221_v17, %v5166_v10  ;;  %v5167_v17 = vld [vmem:[#allocation38_spill] sm:$0xff] }
 0x1aa   : > { %v4439_v29 = vpop.eup %2928  ;;  %2954 = vrsqrt.f32 %v982_v26  ;;  %v984_v42 = vadd.f32 1e-06, %v920_v46  ;;  %v4449_v38 = vpop.xlane.xlu0 %860  ;;  %v4454_v7 = vmul.f32 -1.442695, %v4417_v47  ;;  %v1171_v43 = vmul.f32 %v4374_v20, %v1100_v21  ;;  %v5168_v47 = vld [vmem:[#allocation31_spill] sm:$0xff] }
 0x1ab   : > { %5163 = vst [vmem:[#allocation29_spill] sm:$0xff] %v4439_v29  ;;  %5164 = vst [vmem:[#allocation51_spill] sm:$0xff] %v4442_v55  ;;  %v2931_v18 = vpop.eup %2930  ;;  %2956 = vrsqrt.f32 %v983_v0  ;;  %v922_v39 = vmul.f32 0.0625, %v4363_v61  ;;  %v4460_v10 = vmul.f32 %v2927_v6, %v5167_v17  ;;  %v4463_v26 = vmul.f32 -1.442695, %v4430_v1 }
 0x1ac   : > { %5165 = vst [vmem:[#allocation52_spill] sm:$0xff] %v4445_v54  ;;  %v2933_v56 = vpop.eup %2932  ;;  %v923_v29 = vmul.f32 0.0625, %v4365_v15  ;;  %2958 = vpow2.f32 %v4197_v49  ;;  %v1102_v21 = vmul.f32 %v2925_v53, %v5168_v47  ;;  %v4474_v61 = vmul.f32 -1.442695, %v4442_v55 }
 0x1ad   : > { %2047 = vperm.xlu1 %2765, %v1765_v25   ;;  %v4451_v5 = vpop.xlane.xlu1 %863  ;;  %v4465_v46 = vpop.eup %2934  ;;  %v985_v25 = vadd.f32 1e-06, %v921_v14  ;;  %2960 = vrcp.f32 %v1480_v52  ;;  %v4477_v0 = vmul.f32 -1.442695, %v4445_v54  ;;  %v1160_v6 = vmul.f32 %v4374_v20, %v1089_v35 }
 0x1ae   : > { %v4470_v44 = vpop.eup %2936  ;;  %2962 = vrsqrt.f32 %v984_v42  ;;  %v4483_v47 = vmul.f32 %v2931_v18, %v4164_v30  ;;  %v1469_v53 = vadd.f32 1.0, %v2933_v56  ;;  %v4486_v52 = vadd.f32 %v4398_v60, %v1171_v43 }
 0x1af   : > { %5169 = vst [vmem:[#allocation20_spill] sm:$0xff] %v4470_v44  ;;  %v4480_v14 = vpop.eup %2938  ;;  %v986_v55 = vadd.f32 1e-06, %v922_v39  ;;  %v924_v54 = vmul.f32 0.0625, %v4392_v22  ;;  %v1769_v44 = vld [vmem:[%s3915_s24 + $0x1d0] sm:$0xff]  ;;  %2964 = vrsqrt.f32 %v985_v25  ;;  %v925_v30 = vmul.f32 0.0625, %v4406_v34 }
 0x1b0   : > { %v2941_v17 = vpop.eup %2940  ;;  %v1173_v56 = vmul.f32 %v4374_v20, %v1102_v21  ;;  %2966 = vpow2.f32 %v4294_v50  ;;  %v4508_v25 = vmul.f32 -1.442695, %v4486_v52  ;;  %v5170_v21 = vld [vmem:[#allocation21_spill] sm:$0xff] }
 0x1b1   : > { %2057 = vperm.xlu1 %2765, %v1767_v58   ;;  %v1783_v49 = vpop.permute.xlu1 %1782  ;;  %v1778_v15 = vpop.permute.xlu0 %1777  ;;  %v987_v58 = vadd.f32 1e-06, %v923_v29  ;;  %2968 = vrcp.f32 %v1469_v53  ;;  %v1482_v39 = vadd.f32 1.0, %v2941_v17  ;;  %v988_v50 = vadd.f32 1e-06, %v924_v54 }
 0x1b2   : > { %v2096_v1 = vmul.f32 %v1783_v49, %v4148_v40  ;;  %v2095_v35 = vmul.f32 %v1778_v15, %v4133_v16  ;;  %v4492_v42 = vpop.eup %2942  ;;  %v4503_v16 = vadd.f32 %v4398_v60, %v1160_v6  ;;  %2970 = vrsqrt.f32 %v986_v55  ;;  %v1771_v15 = vld [vmem:[%s3915_s24 + $0x1e0] sm:$0xff] }
 0x1b3   : > { %v2945_v18 = vpop.eup %2944  ;;  %2972 = vrsqrt.f32 %v987_v58  ;;  %v989_v17 = vadd.f32 1e-06, %v925_v30  ;;  %v927_v54 = vmul.f32 0.0625, %v4449_v38  ;;  %v5171_v58 = vld [vmem:[#allocation39_spill] sm:$0xff] }
 0x1b4   : > { %v2692_v22 = vpack.c.bf16 %v2096_v1, %v2096_v1  ;;  %v2691_v40 = vpack.c.bf16 %v2095_v35, %v2095_v35  ;;  %v4505_v29 = vpop.eup %2946  ;;  %v1091_v1 = vmul.f32 %v4244_v27, %v5170_v21  ;;  %v926_v35 = vmul.f32 0.0625, %v4422_v9 }
 0x1b5   : > { %2067 = vperm.xlu1 %2765, %v1769_v44   ;;  %v1788_v34 = vpop.permute.xlu1 %1787  ;;  %v1823_v43 = vpop.permute.xlu0 %1822  ;;  %v4523_v27 = vadd.f32 %v4398_v60, %v1173_v56  ;;  %2974 = vpow2.f32 %v4241_v51  ;;  %v4528_v30 = vmul.f32 %v2945_v18, %v5171_v58  ;;  %v4531_v9 = vmul.f32 -1.442695, %v4503_v16  ;;  %v5172_v18 = vld [vmem:[#allocation33_spill] sm:$0xff] }
 0x1b6   : > { %v4512_v49 = vpop.eup %2948  ;;  %2417 = vst.msk [vmem:[%s4498_s10 + $0x4] sm:$0xf] %vm2415_vm1, %v2692_v22  ;;  %2416 = vst.msk [vmem:[%s4498_s10] sm:$0xf] %vm2415_vm1, %v2691_v40  ;;  %v2097_v44 = vmul.f32 %v1788_v34, %v4156_v11  ;;  %v2104_v6 = vmul.f32 %v1823_v43, %v4260_v63  ;;  %2976 = vrcp.f32 %v1482_v39  ;;  %v1162_v56 = vmul.f32 %v4374_v20, %v1091_v1  ;;  %v1773_v43 = vld [vmem:[%s3915_s24 + $0x1f0] sm:$0xff] }
 0x1b7   : > { %v2951_v53 = vpop.eup %2950  ;;  %2978 = vrsqrt.f32 %v988_v50  ;;  %v1104_v39 = vmul.f32 %v4465_v46, %v5172_v18  ;;  %v4548_v1 = vmul.f32 -1.442695, %v4523_v27  ;;  %v5173_v50 = vld [vmem:[#allocation22_spill] sm:$0xff]  ;;  %v928_v46 = vmul.f32 0.0625, %v4451_v5 }
 0x1b8   : > { %v2953_v55 = vpop.eup %2952  ;;  %v2693_v22 = vpack.c.bf16 %v2097_v44, %v2097_v44  ;;  %v2700_v40 = vpack.c.bf16 %v2104_v6, %v2104_v6  ;;  %2980 = vrsqrt.f32 %v989_v17  ;;  %v990_v44 = vadd.f32 1e-06, %v926_v35 }
 0x1b9   : > { %2077 = vperm.xlu1 %2765, %v1771_v15   ;;  %v1793_v11 = vpop.permute.xlu1 %1792  ;;  %v1833_v63 = vpop.permute.xlu0 %1832  ;;  %v1093_v6 = vmul.f32 %v4277_v8, %v5173_v50  ;;  %2982 = vpow2.f32 %v4308_v33  ;;  %v992_v18 = vadd.f32 1e-06, %v928_v46 }
 0x1ba   : > { %v4534_v34 = vpop.eup %2954  ;;  %2418 = vst.msk [vmem:[%s4498_s10 + $0x8] sm:$0xf] %vm2415_vm1, %v2693_v22  ;;  %2425 = vst.msk [vmem:[%s4498_s10 + $0x24] sm:$0xf] %vm2415_vm1, %v2700_v40  ;;  %v2098_v51 = vmul.f32 %v1793_v11, %v4181_v13  ;;  %v2106_v38 = vmul.f32 %v1833_v63, %v4271_v59  ;;  %v991_v13 = vadd.f32 1e-06, %v927_v54  ;;  %2984 = vpow2.f32 %v4302_v4 }
 0x1bb   : > { %v4545_v21 = vpop.eup %2956  ;;  %v4556_v11 = vadd.f32 %v4398_v60, %v1162_v56  ;;  %v5174_v63 = vld [vmem:[#allocation35_spill] sm:$0xff]  ;;  %2986 = vpow2.f32 %v4341_v2  ;;  %v5175_v54 = vld [vmem:[#allocation24_spill] sm:$0xff]  ;;  %v4572_v56 = vmul.f32 %v2951_v53, %v4194_v19 }
 0x1bc   : > { %v2959_v15 = vpop.eup %2958  ;;  %v2694_v22 = vpack.c.bf16 %v2098_v51, %v2098_v51  ;;  %v2702_v59 = vpack.c.bf16 %v2106_v38, %v2106_v38  ;;  %v1106_v8 = vmul.f32 %v4480_v14, %v5174_v63  ;;  %v1095_v4 = vmul.f32 %v4321_v28, %v5175_v54 }
 0x1bd   : > { %v2961_v40 = vpop.eup %2960  ;;  %2087 = vperm.xlu1 %2765, %v1773_v43   ;;  %v1798_v17 = vpop.permute.xlu1 %1797  ;;  %2988 = vrsqrt.f32 %v990_v44  ;;  %v1175_v14 = vmul.f32 %v4374_v20, %v1104_v39  ;;  %v1164_v51 = vmul.f32 %v4374_v20, %v1093_v6  ;;  %v1471_v43 = vadd.f32 1.0, %v2959_v15  ;;  %v5176_v44 = vld [vmem:[#allocation40_spill] sm:$0xff] }
 0x1be   : > { %v1843_v35 = vpop.permute.xlu0 %1842  ;;  %v4560_v58 = vpop.eup %2962  ;;  %2419 = vst.msk [vmem:[%s4498_s10 + $0xc] sm:$0xf] %vm2415_vm1, %v2694_v22  ;;  %2427 = vst.msk [vmem:[%s4498_s10 + $0x2c] sm:$0xf] %vm2415_vm1, %v2702_v59  ;;  %v2099_v33 = vmul.f32 %v1798_v17, %v4188_v45  ;;  %2990 = vrsqrt.f32 %v991_v13  ;;  %v4579_v22 = vmul.f32 %v2953_v55, %v5176_v44  ;;  %v1177_v19 = vmul.f32 %v4374_v20, %v1106_v8  ;;  %v5177_v59 = vld [vmem:[#allocation3_spill] sm:$0xff] }
 0x1bf   : > { %v2108_v5 = vmul.f32 %v1843_v35, %v4305_v41  ;;  %v4576_v38 = vpop.eup %2964  ;;  %2992 = vpow2.f32 %v4311_v12  ;;  %v1166_v15 = vmul.f32 %v4374_v20, %v1095_v4  ;;  %v4595_v12 = vadd.f32 %v4398_v60, %v1175_v14  ;;  %v5178_v4 = vld [vmem:[#allocation17_spill] sm:$0xff] }
 0x1c0   : > { %v2695_v45 = vpack.c.bf16 %v2099_v33, %v2099_v33  ;;  %v2967_v2 = vpop.eup %2966  ;;  %2994 = vpow2.f32 %v4369_v31  ;;  %v4598_v55 = vadd.f32 %v4398_v60, %v1164_v51  ;;  %v4605_v8 = vmul.f32 %v2961_v40, %v4231_v24 }
 0x1c1   : > { %v2704_v41 = vpack.c.bf16 %v2108_v5, %v2108_v5  ;;  %v1803_v50 = vpop.permute.xlu1 %1802  ;;  %v2969_v53 = vpop.eup %2968  ;;  %2996 = vpow2.f32 %v4379_v62  ;;  %v1484_v17 = vadd.f32 1.0, %v2967_v2  ;;  %v4609_v33 = vmul.f32 -1.442695, %v4556_v11 }
 0x1c2   : > { %v1853_v28 = vpop.permute.xlu0 %1852  ;;  %2420 = vst.msk [vmem:[%s4498_s10 + $0x10] sm:$0xf] %vm2415_vm1, %v2695_v45  ;;  %v2100_v39 = vmul.f32 %v1803_v50, %v4228_v23  ;;  %v4591_v13 = vpop.eup %2970  ;;  %v1108_v23 = vmul.f32 %v4505_v29, %v5177_v59  ;;  %2998 = vrcp.f32 %v1471_v43  ;;  %v4612_v29 = vadd.f32 %v4398_v60, %v1177_v19  ;;  %v5179_v45 = vld [vmem:[#allocation26_spill] sm:$0xff]  ;;  %v5181_v19 = vld [vmem:[#allocation41_spill] sm:$0xff] }
 0x1c3   : > { %2429 = vst.msk [vmem:[%s4498_s10 + $0x34] sm:$0xf] %vm2415_vm1, %v2704_v41  ;;  %v2110_v6 = vmul.f32 %v1853_v28, %v4329_v32  ;;  %v4602_v32 = vpop.eup %2972  ;;  %3000 = vpow2.f32 %v4427_v57  ;;  %v4621_v24 = vadd.f32 %v4398_v60, %v1166_v15  ;;  %v4627_v40 = vmul.f32 -1.442695, %v4595_v12  ;;  %v5180_v41 = vld [vmem:[#allocation23_spill] sm:$0xff]  ;;  %v5182_v15 = vld [vmem:[#allocation5_spill] sm:$0xff] }
 0x1c4   : > { %v2696_v31 = vpack.c.bf16 %v2100_v39, %v2100_v39  ;;  %v2975_v35 = vpop.eup %2974  ;;  %3002 = vrsqrt.f32 %v992_v18  ;;  %v1179_v51 = vmul.f32 %v4374_v20, %v1108_v23  ;;  %v1097_v43 = vmul.f32 %v5180_v41, %v5179_v45 }
 0x1c5   : > { %v2706_v46 = vpack.c.bf16 %v2110_v6, %v2110_v6  ;;  %v1808_v63 = vpop.permute.xlu1 %1807  ;;  %v2977_v5 = vpop.eup %2976  ;;  %3004 = vpow2.f32 %v4437_v3  ;;  %v4635_v50 = vmul.f32 -1.442695, %v4598_v55  ;;  %v4638_v39 = vmul.f32 %v2969_v53, %v5181_v19 }
 0x1c6   : > { %v1863_v62 = vpop.permute.xlu0 %1862  ;;  %2421 = vst.msk [vmem:[%s4498_s10 + $0x14] sm:$0xf] %vm2415_vm1, %v2696_v31  ;;  %v2101_v54 = vmul.f32 %v1808_v63, %v4333_v37  ;;  %v4623_v57 = vpop.eup %2978  ;;  %3006 = vrcp.f32 %v1484_v17  ;;  %v4642_v6 = vmul.f32 -1.442695, %v4612_v29  ;;  %v1110_v59 = vmul.f32 %v4534_v34, %v5182_v15  ;;  %v5186_v15 = vld [vmem:[#allocation7_spill] sm:$0xff] }
 0x1c7   : > { %2431 = vst.msk [vmem:[%s4498_s10 + $0x3c] sm:$0xf] %vm2415_vm1, %v2706_v46  ;;  %v2112_v14 = vmul.f32 %v1863_v62, %v5178_v4  ;;  %v4632_v37 = vpop.eup %2980  ;;  %3008 = vpow2.f32 %v4454_v7  ;;  %v4654_v53 = vmul.f32 -1.442695, %v4621_v24  ;;  %v1473_v17 = vadd.f32 1.0, %v2975_v35  ;;  %v5183_v62 = vld [vmem:[#allocation28_spill] sm:$0xff] }
 0x1c8   : > { %v2697_v2 = vpack.c.bf16 %v2101_v54, %v2101_v54  ;;  %v2983_v28 = vpop.eup %2982  ;;  %3010 = vpow2.f32 %v4463_v26  ;;  %v4657_v63 = vadd.f32 %v4398_v60, %v1179_v51  ;;  %v1168_v34 = vmul.f32 %v4374_v20, %v1097_v43  ;;  %v5184_v54 = vld [vmem:[#allocation25_spill] sm:$0xff]  ;;  %v5185_v51 = vld [vmem:[#allocation44_spill] sm:$0xff] }
 0x1c9   : > { %v2708_v18 = vpack.c.bf16 %v2112_v14, %v2112_v14  ;;  %v1813_v3 = vpop.permute.xlu1 %1812  ;;  %v2985_v23 = vpop.eup %2984  ;;  %v1099_v4 = vmul.f32 %v5184_v54, %v5183_v62  ;;  %v1486_v26 = vadd.f32 1.0, %v2983_v28  ;;  %3012 = vpow2.f32 %v4474_v61  ;;  %v5188_v54 = vld [vmem:[#allocation27_spill] sm:$0xff] }
 0x1ca   : > { %v1873_v44 = vpop.permute.xlu0 %1872  ;;  %2422 = vst.msk [vmem:[%s4498_s10 + $0x18] sm:$0xf] %vm2415_vm1, %v2697_v2  ;;  %v2102_v31 = vmul.f32 %v1813_v3, %v4409_v48  ;;  %v2987_v7 = vpop.eup %2986  ;;  %v4668_v2 = vmul.f32 %v2977_v5, %v5185_v51  ;;  %3014 = vpow2.f32 %v4477_v0  ;;  %v1181_v43 = vmul.f32 %v4374_v20, %v1110_v59 }
 0x1cb   : > { %2433 = vst.msk [vmem:[%s4498_s10 + $0x44] sm:$0xf] %vm2415_vm1, %v2708_v18  ;;  %v2114_v46 = vmul.f32 %v1873_v44, %v4434_v36  ;;  %v4662_v48 = vpop.eup %2988  ;;  %v1475_v18 = vadd.f32 1.0, %v2985_v23  ;;  %v1488_v44 = vadd.f32 1.0, %v2987_v7  ;;  %3016 = vpow2.f32 %v4508_v25 }
 0x1cc   : > { %v2698_v36 = vpack.c.bf16 %v2102_v31, %v2102_v31  ;;  %v4665_v45 = vpop.eup %2990  ;;  %3018 = vrcp.f32 %v1473_v17  ;;  %v4680_v5 = vmul.f32 -1.442695, %v4657_v63  ;;  %v4683_v0 = vadd.f32 %v4398_v60, %v1168_v34  ;;  %v5187_v34 = vld [vmem:[#allocation30_spill] sm:$0xff] }
 0x1cd   : > { %v2710_v14 = vpack.c.bf16 %v2114_v46, %v2114_v46  ;;  %v1818_v35 = vpop.permute.xlu1 %1817  ;;  %v2993_v3 = vpop.eup %2992  ;;  %v1112_v59 = vmul.f32 %v4560_v58, %v5186_v15  ;;  %3020 = vrcp.f32 %v1486_v26  ;;  %v4689_v62 = vadd.f32 %v4398_v60, %v1181_v43 }
 0x1ce   : > { %v1883_v41 = vpop.permute.xlu0 %1882  ;;  %2423 = vst.msk [vmem:[%s4498_s10 + $0x1c] sm:$0xf] %vm2415_vm1, %v2698_v36  ;;  %v2103_v28 = vmul.f32 %v1818_v35, %v4460_v10  ;;  %v2995_v19 = vpop.eup %2994  ;;  %3022 = vrcp.f32 %v1475_v18  ;;  %v1477_v17 = vadd.f32 1.0, %v2993_v3  ;;  %v1101_v36 = vmul.f32 %v5188_v54, %v5187_v34 }
 0x1cf   : > { %2435 = vst.msk [vmem:[%s4498_s10 + $0x4c] sm:$0xf] %vm2415_vm1, %v2710_v14  ;;  %v2116_v61 = vmul.f32 %v1883_v41, %v4483_v47  ;;  %v2997_v23 = vpop.eup %2996  ;;  %v1170_v47 = vmul.f32 %v4374_v20, %v1099_v4  ;;  %3024 = vrcp.f32 %v1488_v44  ;;  %v1490_v26 = vadd.f32 1.0, %v2995_v19  ;;  %v5189_v19 = vld [vmem:[#allocation42_spill] sm:$0xff] }
 0x1d0   : > { %v2699_v10 = vpack.c.bf16 %v2103_v28, %v2103_v28  ;;  %v2999_v25 = vpop.eup %2998  ;;  %v1479_v41 = vadd.f32 1.0, %v2997_v23  ;;  %3026 = vpow2.f32 %v4531_v9  ;;  %v4703_v51 = vmul.f32 -1.442695, %v4683_v0 }
 0x1d1   : > { %v2712_v31 = vpack.c.bf16 %v2116_v61, %v2116_v61  ;;  %v1828_v46 = vpop.permute.xlu1 %1827  ;;  %v3001_v14 = vpop.eup %3000  ;;  %v1183_v18 = vmul.f32 %v4374_v20, %v1112_v59  ;;  %3028 = vpow2.f32 %v4548_v1  ;;  %v1663_v9 = vmul.f32 %v2999_v25, %v5189_v19 }
 0x1d2   : > { %v1893_v7 = vpop.permute.xlu0 %1892  ;;  %2424 = vst.msk [vmem:[%s4498_s10 + $0x20] sm:$0xf] %vm2415_vm1, %v2699_v10  ;;  %v2105_v58 = vmul.f32 %v1828_v46, %v4528_v30  ;;  %v4699_v35 = vpop.eup %3002  ;;  %v4708_v30 = vadd.f32 %v4398_v60, %v1170_v47  ;;  %3030 = vrcp.f32 %v1477_v17  ;;  %v1492_v15 = vadd.f32 1.0, %v3001_v14 }
 0x1d3   : > { %2437 = vst.msk [vmem:[%s4498_s10 + $0x54] sm:$0xf] %vm2415_vm1, %v2712_v31  ;;  %v2118_v4 = vmul.f32 %v1893_v7, %v4572_v56  ;;  %v3005_v43 = vpop.eup %3004  ;;  %v4712_v23 = vmul.f32 -1.442695, %v4689_v62  ;;  %3032 = vrcp.f32 %v1490_v26  ;;  %v1172_v31 = vmul.f32 %v4374_v20, %v1101_v36  ;;  %v5190_v7 = vld [vmem:[#allocation9_spill] sm:$0xff] }
 0x1d4   : > { %v2701_v3 = vpack.c.bf16 %v2105_v58, %v2105_v58  ;;  %v3007_v56 = vpop.eup %3006  ;;  %3034 = vrcp.f32 %v1479_v41  ;;  %v1481_v25 = vadd.f32 1.0, %v3005_v43  ;;  %v4722_v46 = vadd.f32 %v4398_v60, %v1183_v18  ;;  %v5191_v58 = vld [vmem:[#allocation45_spill] sm:$0xff]  ;;  %v5192_v41 = vld [vmem:[#allocation32_spill] sm:$0xff] }
 0x1d5   : > { %v2714_v28 = vpack.c.bf16 %v2118_v4, %v2118_v4  ;;  %v1838_v61 = vpop.permute.xlu1 %1837  ;;  %v3009_v10 = vpop.eup %3008  ;;  %v1114_v17 = vmul.f32 %v4591_v13, %v5190_v7  ;;  %3036 = vpow2.f32 %v4609_v33  ;;  %v1676_v4 = vmul.f32 %v3007_v56, %v5191_v58  ;;  %v5193_v18 = vld [vmem:[#allocation29_spill] sm:$0xff]  ;;  %v5194_v7 = vld [vmem:[#allocation11_spill] sm:$0xff] }
 0x1d6   : > { %v1903_v44 = vpop.permute.xlu0 %1902  ;;  %2426 = vst.msk [vmem:[%s4498_s10 + $0x28] sm:$0xf] %vm2415_vm1, %v2701_v3  ;;  %v2107_v1 = vmul.f32 %v1838_v61, %v4579_v22  ;;  %v3011_v47 = vpop.eup %3010  ;;  %v4728_v22 = vmul.f32 -1.442695, %v4708_v30  ;;  %3038 = vrcp.f32 %v1492_v15  ;;  %v1494_v26 = vadd.f32 1.0, %v3009_v10 }
 0x1d7   : > { %2439 = vst.msk [vmem:[%s4498_s10 + $0x5c] sm:$0xf] %vm2415_vm1, %v2714_v28  ;;  %v2120_v59 = vmul.f32 %v1903_v44, %v4605_v8  ;;  %v3013_v8 = vpop.eup %3012  ;;  %v1103_v43 = vmul.f32 %v5193_v18, %v5192_v41  ;;  %v1483_v28 = vadd.f32 1.0, %v3011_v47  ;;  %3040 = vpow2.f32 %v4627_v40 }
 0x1d8   : > { %v2703_v34 = vpack.c.bf16 %v2107_v1, %v2107_v1  ;;  %v3015_v3 = vpop.eup %3014  ;;  %3042 = vrcp.f32 %v1481_v25  ;;  %v4741_v56 = vmul.f32 -1.442695, %v4722_v46  ;;  %v4744_v44 = vadd.f32 %v4398_v60, %v1172_v31 }
 0x1d9   : > { %v2716_v54 = vpack.c.bf16 %v2120_v59, %v2120_v59  ;;  %v1848_v36 = vpop.permute.xlu1 %1847  ;;  %v3017_v61 = vpop.eup %3016  ;;  %v1185_v19 = vmul.f32 %v4374_v20, %v1114_v17  ;;  %v1496_v1 = vadd.f32 1.0, %v3013_v8  ;;  %3044 = vpow2.f32 %v4635_v50 }
 0x1da   : > { %v1913_v14 = vpop.permute.xlu0 %1912  ;;  %2428 = vst.msk [vmem:[%s4498_s10 + $0x30] sm:$0xf] %vm2415_vm1, %v2703_v34  ;;  %v2109_v13 = vmul.f32 %v1848_v36, %v4638_v39  ;;  %v3019_v15 = vpop.eup %3018  ;;  %3046 = vrcp.f32 %v1494_v26  ;;  %v1485_v47 = vadd.f32 1.0, %v3015_v3  ;;  %v1174_v25 = vmul.f32 %v4374_v20, %v1103_v43  ;;  %v5195_v36 = vld [vmem:[#allocation43_spill] sm:$0xff]  ;;  %v5196_v26 = vld [vmem:[#allocation34_spill] sm:$0xff] }
 0x1db   : > { %2441 = vst.msk [vmem:[%s4498_s10 + $0x64] sm:$0xf] %vm2415_vm1, %v2716_v54  ;;  %v2122_v33 = vmul.f32 %v1913_v14, %v4668_v2  ;;  %v3021_v2 = vpop.eup %3020  ;;  %v1116_v31 = vmul.f32 %v4623_v57, %v5194_v7  ;;  %3048 = vrcp.f32 %v1483_v28  ;;  %v1498_v8 = vadd.f32 1.0, %v3017_v61  ;;  %v5197_v57 = vld [vmem:[#allocation20_spill] sm:$0xff]  ;;  %v5199_v61 = vld [vmem:[#allocation46_spill] sm:$0xff]  ;;  %v5200_v7 = vld [vmem:[#allocation49_spill] sm:$0xff] }
 0x1dc   : > { %v2705_v10 = vpack.c.bf16 %v2109_v13, %v2109_v13  ;;  %v3023_v34 = vpop.eup %3022  ;;  %v1665_v14 = vmul.f32 %v3019_v15, %v5195_v36  ;;  %3050 = vpow2.f32 %v4642_v6  ;;  %v4758_v58 = vmul.f32 -1.442695, %v4744_v44 }
 0x1dd   : > { %v2718_v39 = vpack.c.bf16 %v2122_v33, %v2122_v33  ;;  %v1858_v40 = vpop.permute.xlu1 %1857  ;;  %v3025_v50 = vpop.eup %3024  ;;  %v1105_v41 = vmul.f32 %v5197_v57, %v5196_v26  ;;  %3052 = vrcp.f32 %v1496_v1  ;;  %v1667_v15 = vmul.f32 %v3023_v34, %v5199_v61 }
 0x1de   : > { %v1923_v59 = vpop.permute.xlu0 %1922  ;;  %2430 = vst.msk [vmem:[%s4498_s10 + $0x38] sm:$0xf] %vm2415_vm1, %v2705_v10  ;;  %v2111_v17 = vmul.f32 %v1858_v40, %v1663_v9  ;;  %v3027_v18 = vpop.eup %3026  ;;  %v5198_v9 = vld [vmem:[#allocation47_spill] sm:$0xff]  ;;  %3054 = vrcp.f32 %v1485_v47  ;;  %v4765_v6 = vadd.f32 %v4398_v60, %v1185_v19  ;;  %v1187_v10 = vmul.f32 %v4374_v20, %v1116_v31 }
 0x1df   : > { %2443 = vst.msk [vmem:[%s4498_s10 + $0x6c] sm:$0xf] %vm2415_vm1, %v2718_v39  ;;  %v2124_v54 = vmul.f32 %v1923_v59, %v1676_v4  ;;  %v1678_v4 = vmul.f32 %v3021_v2, %v5198_v9  ;;  %v3029_v13 = vpop.eup %3028  ;;  %3056 = vrcp.f32 %v1498_v8  ;;  %v4773_v1 = vadd.f32 %v4398_v60, %v1174_v25 }
 0x1e0   : > { %v2707_v43 = vpack.c.bf16 %v2111_v17, %v2111_v17  ;;  %v3031_v39 = vpop.eup %3030  ;;  %v1680_v34 = vmul.f32 %v3025_v50, %v5200_v7  ;;  %v1487_v47 = vadd.f32 1.0, %v3027_v18  ;;  %3058 = vpow2.f32 %v4654_v53  ;;  %v5201_v53 = vld [vmem:[#allocation13_spill] sm:$0xff] }
 0x1e1   : > { %v2720_v3 = vpack.c.bf16 %v2124_v54, %v2124_v54  ;;  %v1868_v33 = vpop.permute.xlu1 %1867  ;;  %v3033_v2 = vpop.eup %3032  ;;  %v1176_v19 = vmul.f32 %v4374_v20, %v1105_v41  ;;  %v1500_v36 = vadd.f32 1.0, %v3029_v13  ;;  %3060 = vpow2.f32 %v4680_v5 }
 0x1e2   : > { %v1933_v28 = vpop.permute.xlu0 %1932  ;;  %2432 = vst.msk [vmem:[%s4498_s10 + $0x40] sm:$0xf] %vm2415_vm1, %v2707_v43  ;;  %v2113_v40 = vmul.f32 %v1868_v33, %v1665_v14  ;;  %v3035_v31 = vpop.eup %3034  ;;  %3062 = vpow2.f32 %v4703_v51  ;;  %v2618_v50 = vmul.f32 -1.442695, %v4765_v6  ;;  %v4782_v26 = vadd.f32 %v4398_v60, %v1187_v10 }
 0x1e3   : > { %2445 = vst.msk [vmem:[%s4498_s10 + $0x74] sm:$0xf] %vm2415_vm1, %v2720_v3  ;;  %v2126_v59 = vmul.f32 %v1933_v28, %v1678_v4  ;;  %v3037_v8 = vpop.eup %3036  ;;  %v1118_v57 = vmul.f32 %v4662_v48, %v5201_v53  ;;  %3064 = vpow2.f32 %v4712_v23  ;;  %v4792_v43 = vmul.f32 -1.442695, %v4773_v1  ;;  %v5202_v3 = vld [vmem:[#allocation48_spill] sm:$0xff]  ;;  %v5203_v4 = vld [vmem:[#allocation15_spill] sm:$0xff] }
 0x1e4   : > { %v2709_v17 = vpack.c.bf16 %v2113_v40, %v2113_v40  ;;  %v3039_v41 = vpop.eup %3038  ;;  %v1669_v9 = vmul.f32 %v3031_v39, %v5202_v3  ;;  %v1682_v13 = vmul.f32 %v3033_v2, %v5203_v4  ;;  %3066 = vrcp.f32 %v1487_v47  ;;  %v5204_v2 = vld [vmem:[#allocation2_spill] sm:$0xff] }
 0x1e5   : > { %v2722_v54 = vpack.c.bf16 %v2126_v59, %v2126_v59  ;;  %v1878_v14 = vpop.permute.xlu1 %1877  ;;  %v3041_v51 = vpop.eup %3040  ;;  %v4797_v48 = vadd.f32 %v4398_v60, %v1176_v19  ;;  %3068 = vrcp.f32 %v1500_v36  ;;  %v2620_v39 = vmul.f32 -1.442695, %v4782_v26 }
 0x1e6   : > { %v1943_v25 = vpop.permute.xlu0 %1942  ;;  %2434 = vst.msk [vmem:[%s4498_s10 + $0x48] sm:$0xf] %vm2415_vm1, %v2709_v17  ;;  %v2115_v18 = vmul.f32 %v1878_v14, %v1667_v15  ;;  %v3043_v33 = vpop.eup %3042  ;;  %v1489_v15 = vadd.f32 1.0, %v3037_v8  ;;  %3070 = vpow2.f32 %v4728_v22  ;;  %v1189_v59 = vmul.f32 %v4374_v20, %v1118_v57  ;;  %v5206_v22 = vld [vmem:[#allocation50_spill] sm:$0xff] }
 0x1e7   : > { %2447 = vst.msk [vmem:[%s4498_s10 + $0x7c] sm:$0xf] %vm2415_vm1, %v2722_v54  ;;  %v2128_v5 = vmul.f32 %v1943_v25, %v1680_v34  ;;  %v3045_v23 = vpop.eup %3044  ;;  %v1107_v7 = vmul.f32 %v4492_v42, %v5204_v2  ;;  %v1502_v17 = vadd.f32 1.0, %v3041_v51  ;;  %v5205_v54 = vld [vmem:[#allocation36_spill] sm:$0xff]  ;;  %v1671_v14 = vmul.f32 %v3035_v31, %v5206_v22  ;;  %v5207_v25 = vld [vmem:[#allocation37_spill] sm:$0xff] }
 0x1e8   : > { %v2711_v28 = vpack.c.bf16 %v2115_v18, %v2115_v18  ;;  %v3047_v34 = vpop.eup %3046  ;;  %v1120_v36 = vmul.f32 %v4699_v35, %v5205_v54  ;;  %v1684_v53 = vmul.f32 %v3039_v41, %v5207_v25  ;;  %3072 = vpow2.f32 %v4741_v56  ;;  %v5208_v35 = vld [vmem:[#allocation18_spill] sm:$0xff] }
 0x1e9   : > { %v2724_v61 = vpack.c.bf16 %v2128_v5, %v2128_v5  ;;  %v1888_v10 = vpop.permute.xlu1 %1887  ;;  %v3049_v8 = vpop.eup %3048  ;;  %v2609_v42 = vmul.f32 -1.442695, %v4797_v48  ;;  %3074 = vrcp.f32 %v1489_v15  ;;  %v1491_v3 = vadd.f32 1.0, %v3045_v23 }
 0x1ea   : > { %v1953_v40 = vpop.permute.xlu0 %1952  ;;  %2436 = vst.msk [vmem:[%s4498_s10 + $0x50] sm:$0xf] %vm2415_vm1, %v2711_v28  ;;  %v2117_v47 = vmul.f32 %v1888_v10, %v1669_v9  ;;  %v3051_v57 = vpop.eup %3050  ;;  %3076 = vpow2.f32 %v4758_v58  ;;  %v4817_v31 = vadd.f32 %v4398_v60, %v1189_v59  ;;  %v1178_v56 = vmul.f32 %v4374_v20, %v1107_v7  ;;  %v5209_v10 = vld [vmem:[#allocation19_spill] sm:$0xff]  ;;  %v5210_v58 = vld [vmem:[#allocation4_spill] sm:$0xff] }
 0x1eb   : > { %2449 = vst.msk [vmem:[%s4498_s10 + $0x84] sm:$0xf] %vm2415_vm1, %v2724_v61  ;;  %v2130_v19 = vmul.f32 %v1953_v40, %v1682_v13  ;;  %v3053_v51 = vpop.eup %3052  ;;  %v1673_v13 = vmul.f32 %v3043_v33, %v5208_v35  ;;  %3078 = vrcp.f32 %v1502_v17  ;;  %v1191_v15 = vmul.f32 %v4374_v20, %v1120_v36  ;;  %v5212_v36 = vld [vmem:[#allocation51_spill] sm:$0xff] }
 0x1ec   : > { %v2713_v18 = vpack.c.bf16 %v2117_v47, %v2117_v47  ;;  %v3055_v41 = vpop.eup %3054  ;;  %v1686_v33 = vmul.f32 %v3047_v34, %v5209_v10  ;;  %v1504_v40 = vadd.f32 1.0, %v3051_v57  ;;  %3080 = vpow2.f32 %v2618_v50 }
 0x1ed   : > { %v2726_v5 = vpack.c.bf16 %v2130_v19, %v2130_v19  ;;  %v1898_v9 = vpop.permute.xlu1 %1897  ;;  %v3057_v23 = vpop.eup %3056  ;;  %v1109_v59 = vmul.f32 %v4512_v49, %v5210_v58  ;;  %v5211_v19 = vld [vmem:[#allocation16_spill] sm:$0xff]  ;;  %3082 = vrcp.f32 %v1491_v3  ;;  %v1688_v25 = vmul.f32 %v3053_v51, %v5212_v36  ;;  %v5213_v3 = vld [vmem:[#allocation6_spill] sm:$0xff] }
 0x1ee   : > { %v1963_v4 = vpop.permute.xlu0 %1962  ;;  %2438 = vst.msk [vmem:[%s4498_s10 + $0x58] sm:$0xf] %vm2415_vm1, %v2713_v18  ;;  %v2119_v28 = vmul.f32 %v1898_v9, %v1671_v14  ;;  %v3059_v2 = vpop.eup %3058  ;;  %v1675_v54 = vmul.f32 %v3049_v8, %v5211_v19  ;;  %3084 = vpow2.f32 %v4792_v43  ;;  %v2622_v34 = vmul.f32 -1.442695, %v4817_v31 }
 0x1ef   : > { %2451 = vst.msk [vmem:[%s4498_s10 + $0x8c] sm:$0xf] %vm2415_vm1, %v2726_v5  ;;  %v2132_v61 = vmul.f32 %v1963_v4, %v1684_v53  ;;  %v3061_v22 = vpop.eup %3060  ;;  %v4833_v50 = vadd.f32 %v4398_v60, %v1178_v56  ;;  %3086 = vpow2.f32 %v2620_v39  ;;  %v4840_v57 = vadd.f32 %v4398_v60, %v1191_v15 }
 0x1f0   : > { %v2715_v7 = vpack.c.bf16 %v2119_v28, %v2119_v28  ;;  %v3063_v53 = vpop.eup %3062  ;;  %3088 = vrcp.f32 %v1504_v40  ;;  %v1493_v5 = vadd.f32 1.0, %v3059_v2  ;;  %v1180_v43 = vmul.f32 %v4374_v20, %v1109_v59  ;;  %v5215_v59 = vld [vmem:[#allocation8_spill] sm:$0xff] }
 0x1f1   : > { %v2728_v47 = vpack.c.bf16 %v2132_v61, %v2132_v61  ;;  %v1908_v17 = vpop.permute.xlu1 %1907  ;;  %v3065_v18 = vpop.eup %3064  ;;  %v1111_v51 = vmul.f32 %v4545_v21, %v5213_v3  ;;  %v1506_v56 = vadd.f32 1.0, %v3061_v22  ;;  %3090 = vpow2.f32 %v2609_v42  ;;  %v5214_v61 = vld [vmem:[#allocation52_spill] sm:$0xff] }
 0x1f2   : > { %v1973_v14 = vpop.permute.xlu0 %1972  ;;  %2440 = vst.msk [vmem:[%s4498_s10 + $0x60] sm:$0xf] %vm2415_vm1, %v2715_v7  ;;  %v2121_v49 = vmul.f32 %v1908_v17, %v1673_v13  ;;  %v3067_v9 = vpop.eup %3066  ;;  %v1677_v15 = vmul.f32 %v3055_v41, %v5214_v61  ;;  %v1495_v10 = vadd.f32 1.0, %v3063_v53  ;;  %3092 = vpow2.f32 %v2622_v34  ;;  %v4858_v7 = vld [vmem:[%s4990_s1] ss:$0 sm:$0xff] }
 0x1f3   : > { %2453 = vst.msk [vmem:[%s4498_s10 + $0x94] sm:$0xf] %vm2415_vm1, %v2728_v47  ;;  %v2134_v8 = vmul.f32 %v1973_v14, %v1686_v33  ;;  %v3069_v13 = vpop.eup %3068  ;;  %v2611_v33 = vmul.f32 -1.442695, %v4833_v50  ;;  %v1508_v58 = vadd.f32 1.0, %v3065_v18  ;;  %v1113_v42 = vmul.f32 %v4576_v38, %v5215_v59 }
 0x1f4   : > { %v2717_v4 = vpack.c.bf16 %v2121_v49, %v2121_v49  ;;  %v3071_v40 = vpop.eup %3070  ;;  %v1690_v2 = vmul.f32 %v3057_v23, %v4486_v52  ;;  %3094 = vrcp.f32 %v1493_v5  ;;  %v2624_v41 = vmul.f32 -1.442695, %v4840_v57  ;;  %v5216_v5 = vld [vmem:[#allocation10_spill] sm:$0xff] }
 0x1f5   : > { %v2730_v35 = vpack.c.bf16 %v2134_v8, %v2134_v8  ;;  %v1918_v39 = vpop.permute.xlu1 %1917  ;;  %v1182_v47 = vmul.f32 %v4858_v7, %v1111_v51  ;;  %v3073_v19 = vpop.eup %3072  ;;  %3096 = vrcp.f32 %v1506_v56  ;;  %v4862_v38 = vadd.f32 %v4398_v60, %v1180_v43 }
 0x1f6   : > { %v1983_v28 = vpop.permute.xlu0 %1982  ;;  %2442 = vst.msk [vmem:[%s4498_s10 + $0x68] sm:$0xf] %vm2415_vm1, %v2717_v4  ;;  %v2123_v20 = vmul.f32 %v1918_v39, %v1675_v54  ;;  %v3075_v52 = vpop.eup %3074  ;;  %v1679_v14 = vmul.f32 %v3067_v9, %v4503_v16  ;;  %v1692_v36 = vmul.f32 %v3069_v13, %v4523_v27  ;;  %3098 = vrcp.f32 %v1495_v10  ;;  %v4874_v16 = vld [vmem:[%s4991_s2] ss:$0 sm:$0xff] }
 0x1f7   : > { %2455 = vst.msk [vmem:[%s4498_s10 + $0x9c] sm:$0xf] %vm2415_vm1, %v2730_v35  ;;  %v2136_v21 = vmul.f32 %v1983_v28, %v1688_v25  ;;  %v1497_v25 = vadd.f32 1.0, %v3071_v40  ;;  %v3077_v34 = vpop.eup %3076  ;;  %3100 = vrcp.f32 %v1508_v58  ;;  %v1184_v60 = vmul.f32 %v4858_v7, %v1113_v42 }
 0x1f8   : > { %v2719_v54 = vpack.c.bf16 %v2123_v20, %v2123_v20  ;;  %v3079_v8 = vpop.eup %3078  ;;  %v1510_v18 = vadd.f32 1.0, %v3073_v19  ;;  %3102 = vpow2.f32 %v2611_v33  ;;  %v4877_v27 = vadd.f32 %v4874_v16, %v1182_v47  ;;  %v5217_v33 = vld [vmem:[#allocation12_spill] sm:$0xff] }
 0x1f9   : > { %v2732_v22 = vpack.c.bf16 %v2136_v21, %v2136_v21  ;;  %v1928_v23 = vpop.permute.xlu1 %1927  ;;  %v1115_v43 = vmul.f32 %v4602_v32, %v5216_v5  ;;  %v3081_v3 = vpop.eup %3080  ;;  %3104 = vpow2.f32 %v2624_v41  ;;  %v2613_v4 = vmul.f32 -1.442695, %v4862_v38 }
 0x1fa   : > { %v1993_v17 = vpop.permute.xlu0 %1992  ;;  %2444 = vst.msk [vmem:[%s4498_s10 + $0x70] sm:$0xf] %vm2415_vm1, %v2719_v54  ;;  %v2125_v53 = vmul.f32 %v1928_v23, %v1677_v15  ;;  %v3083_v35 = vpop.eup %3082  ;;  %v1681_v39 = vmul.f32 %v3075_v52, %v4556_v11  ;;  %3106 = vrcp.f32 %v1497_v25  ;;  %v1499_v28 = vadd.f32 1.0, %v3077_v34 }
 0x1fb   : > { %2457 = vst.msk [vmem:[%s4498_s10 + $0xa4] sm:$0xf] %vm2415_vm1, %v2732_v22  ;;  %v2138_v49 = vmul.f32 %v1993_v17, %v1690_v2  ;;  %v3085_v61 = vpop.eup %3084  ;;  %v4888_v10 = vadd.f32 %v4874_v16, %v1184_v60  ;;  %v1117_v40 = vmul.f32 %v4632_v37, %v5217_v33  ;;  %3108 = vrcp.f32 %v1510_v18 }
 0x1fc   : > { %v2721_v51 = vpack.c.bf16 %v2125_v53, %v2125_v53  ;;  %v3087_v20 = vpop.eup %3086  ;;  %v1512_v21 = vadd.f32 1.0, %v3081_v3  ;;  %v2615_v11 = vmul.f32 -1.442695, %v4877_v27  ;;  %v1186_v58 = vmul.f32 %v4858_v7, %v1115_v43 }
 0x1fd   : > { %v2734_v9 = vpack.c.bf16 %v2138_v49, %v2138_v49  ;;  %v1938_v56 = vpop.permute.xlu1 %1937  ;;  %v3089_v59 = vpop.eup %3088  ;;  %v1694_v41 = vmul.f32 %v3079_v8, %v4595_v12  ;;  %3110 = vpow2.f32 %v2613_v4  ;;  %v1683_v37 = vmul.f32 %v3083_v35, %v4598_v55  ;;  %v5218_v55 = vld [vmem:[#allocation14_spill] sm:$0xff] }
 0x1fe   : > { %v2003_v13 = vpop.permute.xlu0 %2002  ;;  %2446 = vst.msk [vmem:[%s4498_s10 + $0x78] sm:$0xf] %vm2415_vm1, %v2721_v51  ;;  %v2127_v15 = vmul.f32 %v1938_v56, %v1679_v14  ;;  %v3091_v47 = vpop.eup %3090  ;;  %3112 = vrcp.f32 %v1499_v28  ;;  %v1501_v22 = vadd.f32 1.0, %v3085_v61  ;;  %v2617_v14 = vmul.f32 -1.442695, %v4888_v10 }
 0x1ff   : > { %2459 = vst.msk [vmem:[%s4498_s10 + $0xac] sm:$0xf] %vm2415_vm1, %v2734_v9  ;;  %v2140_v32 = vmul.f32 %v2003_v13, %v1692_v36  ;;  %v3093_v52 = vpop.eup %3092  ;;  %v1188_v36 = vmul.f32 %v4858_v7, %v1117_v40  ;;  %3114 = vrcp.f32 %v1512_v21  ;;  %v1514_v12 = vadd.f32 1.0, %v3087_v20 }
 0x200   : > { %v2723_v42 = vpack.c.bf16 %v2127_v15, %v2127_v15  ;;  %v4903_v25 = vadd.f32 %v4874_v16, %v1186_v58  ;;  %v1119_v34 = vmul.f32 %v4665_v45, %v5218_v55  ;;  %v1696_v8 = vmul.f32 %v3089_v59, %v4612_v29 }
 0x201   : > { %v2736_v2 = vpack.c.bf16 %v2140_v32, %v2140_v32  ;;  %v1948_v19 = vpop.permute.xlu1 %1947  ;;  %v3095_v53 = vpop.eup %3094  ;;  %3116 = vpow2.f32 %v2615_v11  ;;  %v1503_v3 = vadd.f32 1.0, %v3091_v47  ;;  %v1516_v35 = vadd.f32 1.0, %v3093_v52 }
 0x202   : > { %v2013_v54 = vpop.permute.xlu0 %2012  ;;  %2448 = vst.msk [vmem:[%s4498_s10 + $0x80] sm:$0xf] %vm2415_vm1, %v2723_v42  ;;  %v2129_v23 = vmul.f32 %v1948_v19, %v1681_v39  ;;  %v3097_v18 = vpop.eup %3096  ;;  %3118 = vrcp.f32 %v1501_v22  ;;  %v4913_v45 = vadd.f32 %v4874_v16, %v1188_v36  ;;  %v1685_v29 = vmul.f32 %v3095_v53, %v4621_v24 }
 0x203   : > { %2461 = vst.msk [vmem:[%s4498_s10 + $0xb4] sm:$0xf] %vm2415_vm1, %v2736_v2  ;;  %v2142_v17 = vmul.f32 %v2013_v54, %v1694_v41  ;;  %v3099_v51 = vpop.eup %3098  ;;  %3120 = vrcp.f32 %v1514_v12  ;;  %v2619_v13 = vmul.f32 -1.442695, %v4903_v25  ;;  %v1190_v39 = vmul.f32 %v4858_v7, %v1119_v34 }
 0x204   : > { %v2725_v49 = vpack.c.bf16 %v2129_v23, %v2129_v23  ;;  %v3101_v56 = vpop.eup %3100  ;;  %v1698_v32 = vmul.f32 %v3097_v18, %v4657_v63  ;;  %3122 = vpow2.f32 %v2617_v14  ;;  %v2621_v7 = vmul.f32 -1.442695, %v4913_v45 }
 0x205   : > { %v2738_v60 = vpack.c.bf16 %v2142_v17, %v2142_v17  ;;  %v1958_v5 = vpop.permute.xlu1 %1957  ;;  %v3103_v28 = vpop.eup %3102  ;;  %3124 = vrcp.f32 %v1503_v3  ;;  %v1687_v58 = vmul.f32 %v3099_v51, %v4683_v0  ;;  %v4926_v59 = vadd.f32 %v4874_v16, %v1190_v39 }
 0x206   : > { %v2023_v43 = vpop.permute.xlu0 %2022  ;;  %2450 = vst.msk [vmem:[%s4498_s10 + $0x88] sm:$0xf] %vm2415_vm1, %v2725_v49  ;;  %v2131_v9 = vmul.f32 %v1958_v5, %v1683_v37  ;;  %v3105_v33 = vpop.eup %3104  ;;  %3126 = vrcp.f32 %v1516_v35  ;;  %v1505_v63 = vadd.f32 1.0, %v3103_v28  ;;  %v1700_v47 = vmul.f32 %v3101_v56, %v4689_v62 }
 0x207   : > { %2463 = vst.msk [vmem:[%s4498_s10 + $0xbc] sm:$0xf] %vm2415_vm1, %v2738_v60  ;;  %v2144_v4 = vmul.f32 %v2023_v43, %v1696_v8  ;;  %v3107_v21 = vpop.eup %3106  ;;  %3128 = vpow2.f32 %v2619_v13  ;;  %v1518_v19 = vadd.f32 1.0, %v3105_v33  ;;  %v2623_v62 = vmul.f32 -1.442695, %v4926_v59 }
 0x208   : > { %v2727_v61 = vpack.c.bf16 %v2131_v9, %v2131_v9  ;;  %v3109_v42 = vpop.eup %3108  ;;  %3130 = vpow2.f32 %v2621_v7  ;;  %v1689_v16 = vmul.f32 %v3107_v21, %v4708_v30 }
 0x209   : > { %v2740_v15 = vpack.c.bf16 %v2144_v4, %v2144_v4  ;;  %v1968_v40 = vpop.permute.xlu1 %1967  ;;  %v1702_v17 = vmul.f32 %v3109_v42, %v4722_v46  ;;  %3132 = vrcp.f32 %v1505_v63 }
 0x20a   : > { %v2033_v20 = vpop.permute.xlu0 %2032  ;;  %2452 = vst.msk [vmem:[%s4498_s10 + $0x90] sm:$0xf] %vm2415_vm1, %v2727_v61  ;;  %v2133_v24 = vmul.f32 %v1968_v40, %v1685_v29  ;;  %v3111_v54 = vpop.eup %3110  ;;  %3134 = vrcp.f32 %v1518_v19 }
 0x20b   : > { %2465 = vst.msk [vmem:[%s4498_s10 + $0xc4] sm:$0xf] %vm2415_vm1, %v2740_v15  ;;  %v2146_v11 = vmul.f32 %v2033_v20, %v1698_v32  ;;  %v3113_v52 = vpop.eup %3112  ;;  %v1507_v55 = vadd.f32 1.0, %v3111_v54  ;;  %3136 = vpow2.f32 %v2623_v62 }
 0x20c   : > { %v2729_v2 = vpack.c.bf16 %v2133_v24, %v2133_v24  ;;  %v3115_v14 = vpop.eup %3114  ;;  %v1691_v8 = vmul.f32 %v3113_v52, %v4744_v44 }
 0x20d   : > { %v2742_v41 = vpack.c.bf16 %v2146_v11, %v2146_v11  ;;  %v1978_v37 = vpop.permute.xlu1 %1977  ;;  %v1704_v18 = vmul.f32 %v3115_v14, %v4765_v6  ;;  %3138 = vrcp.f32 %v1507_v55 }
 0x20e   : > { %v2043_v22 = vpop.permute.xlu0 %2042  ;;  %2454 = vst.msk [vmem:[%s4498_s10 + $0x98] sm:$0xf] %vm2415_vm1, %v2729_v2  ;;  %v2135_v0 = vmul.f32 %v1978_v37, %v1687_v58  ;;  %v3117_v34 = vpop.eup %3116 }
 0x20f   : > { %2467 = vst.msk [vmem:[%s4498_s10 + $0xcc] sm:$0xf] %vm2415_vm1, %v2742_v41  ;;  %v2148_v23 = vmul.f32 %v2043_v22, %v1700_v47  ;;  %v3119_v60 = vpop.eup %3118  ;;  %v1509_v51 = vadd.f32 1.0, %v3117_v34 }
 0x210   : > { %v2731_v36 = vpack.c.bf16 %v2135_v0, %v2135_v0  ;;  %v3121_v5 = vpop.eup %3120  ;;  %v1693_v6 = vmul.f32 %v3119_v60, %v4773_v1 }
 0x211   : > { %v2744_v12 = vpack.c.bf16 %v2148_v23, %v2148_v23  ;;  %v1988_v53 = vpop.permute.xlu1 %1987  ;;  %v3123_v9 = vpop.eup %3122  ;;  %v1706_v39 = vmul.f32 %v3121_v5, %v4782_v26  ;;  %3140 = vrcp.f32 %v1509_v51 }
 0x212   : > { %v2053_v49 = vpop.permute.xlu0 %2052  ;;  %2456 = vst.msk [vmem:[%s4498_s10 + $0xa0] sm:$0xf] %vm2415_vm1, %v2731_v36  ;;  %v2137_v30 = vmul.f32 %v1988_v53, %v1689_v16  ;;  %v3125_v56 = vpop.eup %3124  ;;  %v1511_v32 = vadd.f32 1.0, %v3123_v9 }
 0x213   : > { %2469 = vst.msk [vmem:[%s4498_s10 + $0xd4] sm:$0xf] %vm2415_vm1, %v2744_v12  ;;  %v2150_v46 = vmul.f32 %v2053_v49, %v1702_v17  ;;  %v3127_v13 = vpop.eup %3126  ;;  %v1695_v1 = vmul.f32 %v3125_v56, %v4797_v48 }
 0x214   : > { %v2733_v43 = vpack.c.bf16 %v2137_v30, %v2137_v30  ;;  %v3129_v28 = vpop.eup %3128  ;;  %v1708_v63 = vmul.f32 %v3127_v13, %v4817_v31  ;;  %3142 = vrcp.f32 %v1511_v32 }
 0x215   : > { %v2746_v3 = vpack.c.bf16 %v2150_v46, %v2150_v46  ;;  %v1998_v4 = vpop.permute.xlu1 %1997  ;;  %v3131_v24 = vpop.eup %3130  ;;  %v1513_v11 = vadd.f32 1.0, %v3129_v28 }
 0x216   : > { %v2063_v35 = vpop.permute.xlu0 %2062  ;;  %2458 = vst.msk [vmem:[%s4498_s10 + $0xa8] sm:$0xf] %vm2415_vm1, %v2733_v43  ;;  %v2139_v29 = vmul.f32 %v1998_v4, %v1691_v8  ;;  %v3133_v26 = vpop.eup %3132  ;;  %v1515_v48 = vadd.f32 1.0, %v3131_v24 }
 0x217   : > { %2471 = vst.msk [vmem:[%s4498_s10 + $0xdc] sm:$0xf] %vm2415_vm1, %v2746_v3  ;;  %v2152_v44 = vmul.f32 %v2063_v35, %v1704_v18  ;;  %v3135_v42 = vpop.eup %3134  ;;  %3144 = vrcp.f32 %v1513_v11  ;;  %v1697_v52 = vmul.f32 %v3133_v26, %v4833_v50 }
 0x218   : > { %v2735_v61 = vpack.c.bf16 %v2139_v29, %v2139_v29  ;;  %v3137_v54 = vpop.eup %3136  ;;  %v1710_v31 = vmul.f32 %v3135_v42, %v4840_v57  ;;  %3146 = vrcp.f32 %v1515_v48 }
 0x219   : > { %v2748_v15 = vpack.c.bf16 %v2152_v44, %v2152_v44  ;;  %v2008_v33 = vpop.permute.xlu1 %2007  ;;  %v1517_v50 = vadd.f32 1.0, %v3137_v54 }
 0x21a   : > { %v2073_v40 = vpop.permute.xlu0 %2072  ;;  %2460 = vst.msk [vmem:[%s4498_s10 + $0xb0] sm:$0xf] %vm2415_vm1, %v2735_v61  ;;  %v2141_v20 = vmul.f32 %v2008_v33, %v1693_v6  ;;  %v3139_v0 = vpop.eup %3138 }
 0x21b   : > { %2473 = vst.msk [vmem:[%s4498_s10 + $0xe4] sm:$0xf] %vm2415_vm1, %v2748_v15  ;;  %v2154_v21 = vmul.f32 %v2073_v40, %v1706_v39  ;;  %v1699_v12 = vmul.f32 %v3139_v0, %v4862_v38  ;;  %3148 = vrcp.f32 %v1517_v50 }
 0x21c   : > { %v2737_v7 = vpack.c.bf16 %v2141_v20, %v2141_v20 }
 0x21d   : > { %v2750_v58 = vpack.c.bf16 %v2154_v21, %v2154_v21  ;;  %v2018_v2 = vpop.permute.xlu1 %2017 }
 0x21e   : > { %v2083_v41 = vpop.permute.xlu0 %2082  ;;  %2462 = vst.msk [vmem:[%s4498_s10 + $0xb8] sm:$0xf] %vm2415_vm1, %v2737_v7  ;;  %v2143_v47 = vmul.f32 %v2018_v2, %v1695_v1  ;;  %v3141_v55 = vpop.eup %3140 }
 0x21f   : > { %2475 = vst.msk [vmem:[%s4498_s10 + $0xec] sm:$0xf] %vm2415_vm1, %v2750_v58  ;;  %v2156_v19 = vmul.f32 %v2083_v41, %v1708_v63  ;;  %v1701_v49 = vmul.f32 %v3141_v55, %v4877_v27 }
 0x220   : > { %v2739_v37 = vpack.c.bf16 %v2143_v47, %v2143_v47 }
 0x221   : > { %v2752_v22 = vpack.c.bf16 %v2156_v19, %v2156_v19  ;;  %v2028_v23 = vpop.permute.xlu1 %2027  ;;  %v3143_v60 = vpop.eup %3142 }
 0x222   : > { %v2093_v16 = vpop.permute.xlu0 %2092  ;;  %2464 = vst.msk [vmem:[%s4498_s10 + $0xc0] sm:$0xf] %vm2415_vm1, %v2739_v37  ;;  %v2145_v17 = vmul.f32 %v2028_v23, %v1697_v52  ;;  %v1703_v18 = vmul.f32 %v3143_v60, %v4888_v10 }
 0x223   : > { %2477 = vst.msk [vmem:[%s4498_s10 + $0xf4] sm:$0xf] %vm2415_vm1, %v2752_v22  ;;  %v2158_v62 = vmul.f32 %v2093_v16, %v1710_v31 }
 0x224   : > { %v2741_v14 = vpack.c.bf16 %v2145_v17, %v2145_v17  ;;  %v3145_v38 = vpop.eup %3144 }
 0x225   : > { %v2754_v36 = vpack.c.bf16 %v2158_v62, %v2158_v62  ;;  %v2038_v57 = vpop.permute.xlu1 %2037  ;;  %v3147_v3 = vpop.eup %3146  ;;  %v1705_v27 = vmul.f32 %v3145_v38, %v4903_v25 }
 0x226   : > { %2466 = vst.msk [vmem:[%s4498_s10 + $0xc8] sm:$0xf] %vm2415_vm1, %v2741_v14  ;;  %v2147_v34 = vmul.f32 %v2038_v57, %v1699_v12  ;;  %v1707_v56 = vmul.f32 %v3147_v3, %v4913_v45 }
 0x227   : > { %2479 = vst.msk [vmem:[%s4498_s10 + $0xfc] sm:$0xf] %vm2415_vm1, %v2754_v36 }
 0x228   : > { %v2743_v53 = vpack.c.bf16 %v2147_v34, %v2147_v34  ;;  %v3149_v29 = vpop.eup %3148 }
 0x229   : > { %v2048_v30 = vpop.permute.xlu1 %2047  ;;  %v1709_v6 = vmul.f32 %v3149_v29, %v4926_v59 }
 0x22a   : > { %2468 = vst.msk [vmem:[%s4498_s10 + $0xd0] sm:$0xf] %vm2415_vm1, %v2743_v53  ;;  %v2149_v46 = vmul.f32 %v2048_v30, %v1701_v49 }
 0x22c   : > { %v2745_v8 = vpack.c.bf16 %v2149_v46, %v2149_v46 }
 0x22d   : > { %v2058_v5 = vpop.permute.xlu1 %2057 }
 0x22e   : > { %2470 = vst.msk [vmem:[%s4498_s10 + $0xd8] sm:$0xf] %vm2415_vm1, %v2745_v8  ;;  %v2151_v43 = vmul.f32 %v2058_v5, %v1703_v18 }
 0x230   : > { %v2747_v51 = vpack.c.bf16 %v2151_v43, %v2151_v43 }
 0x231   : > { %v2068_v9 = vpop.permute.xlu1 %2067 }
 0x232   : > { %2472 = vst.msk [vmem:[%s4498_s10 + $0xe0] sm:$0xf] %vm2415_vm1, %v2747_v51  ;;  %v2153_v4 = vmul.f32 %v2068_v9, %v1705_v27 }
 0x234   : > { %v2749_v35 = vpack.c.bf16 %v2153_v4, %v2153_v4 }
 0x235   : > { %v2078_v44 = vpop.permute.xlu1 %2077 }
 0x236   : > { %2474 = vst.msk [vmem:[%s4498_s10 + $0xe8] sm:$0xf] %vm2415_vm1, %v2749_v35  ;;  %v2155_v10 = vmul.f32 %v2078_v44, %v1707_v56 }
 0x238   : > { %v2751_v13 = vpack.c.bf16 %v2155_v10, %v2155_v10 }
 0x239   : > { %v2088_v39 = vpop.permute.xlu1 %2087 }
 0x23a   : > { %2476 = vst.msk [vmem:[%s4498_s10 + $0xf0] sm:$0xf] %vm2415_vm1, %v2751_v13  ;;  %v2157_v25 = vmul.f32 %v2088_v39, %v1709_v6 }
 0x23c   : > { %v2753_v28 = vpack.c.bf16 %v2157_v25, %v2157_v25 }
 0x23e   : > { %2478 = vst.msk [vmem:[%s4498_s10 + $0xf8] sm:$0xf] %vm2415_vm1, %v2753_v28 }
 0x23f PF: > { %s14_s15 = sadd.s32 1, %s3160_s15  }
 0x240   : > { %p11_p4 = scmp.ge.s32.totalorder %s14_s15, 4  }
 0x242   :  { %13 = sbr.rel (!%p11_p4) target bundleno = 1 (0x1), region = 69 }

</bundles_post_ra>
